<compile_context>
chip_gen: v7x
topology: tpu7x:2x2x1
jax: 0.10.0
libtpu: 0.0.40
codegen_flags: <defaults>
</compile_context>

<pallas_src>
import functools
import math

import jax
import jax.numpy as jnp
from jax.experimental import pallas as pl
from jax.experimental.pallas import tpu as pltpu


def _graph_net_kernel(adj_ref, x_ref, w1_ref, b1_ref, w2_ref, b2_ref, o_ref,
                      sup_ref, h1_ref, acc_ref, *, tm, tk):
    p = pl.program_id(0)            # layer phase: 0 -> gc1, 1 -> gc2
    i = pl.program_id(1)            # row tile of adj / output
    k = pl.program_id(2)            # reduction tile over adj columns
    nk = pl.num_programs(2)
    koff = pl.multiple_of(k * tk, tk)

    # Build the dense support matrix (features @ W) one (tk, d_pad) slice per
    # k step of the first row tile of each layer.  It stays resident in VMEM
    # and is reused by every later row tile of that layer.
    @pl.when(i == 0)
    def _():
        @pl.when(p == 0)
        def _():
            sup_ref[pl.ds(koff, tk), :] = jnp.dot(
                x_ref[...], w1_ref[...],
                preferred_element_type=jnp.float32).astype(sup_ref.dtype)

        @pl.when(p == 1)
        def _():
            sup_ref[pl.ds(koff, tk), :] = jnp.dot(
                h1_ref[pl.ds(koff, tk), :], w2_ref[...],
                preferred_element_type=jnp.float32).astype(sup_ref.dtype)

    # (tm, tk) bf16 adj tile @ (tk, d_pad) bf16 support tile -> f32 on MXU.
    contrib = jnp.dot(adj_ref[...], sup_ref[pl.ds(koff, tk), :],
                      preferred_element_type=jnp.float32)

    # Layer 1: accumulate in f32 scratch; finalize relu(acc + b1) -> bf16 h1.
    @pl.when(p == 0)
    def _():
        @pl.when(k == 0)
        def _():
            acc_ref[...] = contrib

        @pl.when(k != 0)
        def _():
            acc_ref[...] += contrib

        @pl.when(k == nk - 1)
        def _():
            ioff = pl.multiple_of(i * tm, tm)
            h1_ref[pl.ds(ioff, tm), :] = jnp.maximum(
                acc_ref[...] + b1_ref[...], 0.0).astype(h1_ref.dtype)

    # Layer 2: accumulate straight into the resident (tm, d_pad) output block
    # (its block index is constant across k; fully overwritten at k == 0 so no
    # stale VMEM ever reaches HBM), add bias on the last k step.
    @pl.when(p == 1)
    def _():
        @pl.when(k == 0)
        def _():
            o_ref[...] = contrib

        @pl.when(k != 0)
        def _():
            o_ref[...] += contrib

        @pl.when(k == nk - 1)
        def _():
            o_ref[...] += b2_ref[...]


def _round_up(v, m):
    return ((v + m - 1) // m) * m


def graph_net_forward(x, adj, w1, b1, w2, b2, *, tm=256, tk=256):
    """Fused 2-layer GCN forward.

    x: [N, nfeat], adj: [N, N], w1: [nfeat, nhid], b1: [nhid],
    w2: [nhid, nout], b2: [nout]  ->  [N, nout] (float32).
    """
    n, nfeat = x.shape
    nhid = w1.shape[1]
    nout = w2.shape[1]

    # Rows padded to the tile size; feature dims padded to full 128-lane vregs
    # so every store is lane-dense.  Hidden and output widths share one padded
    # width so a single support / h1 scratch serves both layers.
    n_pad = _round_up(n, max(tm, tk))
    f_pad = _round_up(nfeat, 128)
    d_pad = _round_up(max(nhid, nout), 128)

    f32, bf16 = jnp.float32, jnp.bfloat16
    # MXU operands stored in bf16 (halves the dominant adj HBM stream, native
    # MXU dtype); biases, accumulators and the output stay f32.
    adj_p = jnp.zeros((n_pad, n_pad), bf16).at[:n, :n].set(adj.astype(bf16))
    x_p = jnp.zeros((n_pad, f_pad), bf16).at[:n, :nfeat].set(x.astype(bf16))
    w1_p = jnp.zeros((f_pad, d_pad), bf16).at[:nfeat, :nhid].set(w1.astype(bf16))
    w2_p = jnp.zeros((d_pad, d_pad), bf16).at[:nhid, :nout].set(w2.astype(bf16))
    b1_p = jnp.zeros((1, d_pad), f32).at[0, :nhid].set(b1.astype(f32))
    b2_p = jnp.zeros((1, d_pad), f32).at[0, :nout].set(b2.astype(f32))

    grid = (2, n_pad // tm, n_pad // tk)

    def x_index_map(p, i, k):
        # x is only consumed while building the layer-1 support (p==0, i==0);
        # pin the block otherwise so it is not redundantly re-fetched at i>0.
        return (jnp.where((p == 0) & (i == 0), k, 0), 0)

    flops = int(2 * n_pad * f_pad * d_pad + 2 * n_pad * d_pad * d_pad
                + 2 * 2 * n_pad * n_pad * d_pad)
    bytes_accessed = int(2 * (2 * n_pad * n_pad + n_pad * f_pad
                              + f_pad * d_pad + d_pad * d_pad)
                         + 4 * (2 * d_pad + n_pad * d_pad))

    # TODO(synk): pipeline_mode=pl.Buffered(1) on the constant-index_map
    # weight/bias specs would shave their double-buffer VMEM at large N.
    out_p = pl.pallas_call(
        functools.partial(_graph_net_kernel, tm=tm, tk=tk),
        out_shape=jax.ShapeDtypeStruct((n_pad, d_pad), f32),
        grid=grid,
        in_specs=[
            pl.BlockSpec((tm, tk), lambda p, i, k: (i, k)),        # adj tile
            pl.BlockSpec((tk, f_pad), x_index_map),                # x (streamed)
            pl.BlockSpec((f_pad, d_pad), lambda p, i, k: (0, 0)),  # W1
            pl.BlockSpec((1, d_pad), lambda p, i, k: (0, 0)),      # b1
            pl.BlockSpec((d_pad, d_pad), lambda p, i, k: (0, 0)),  # W2
            pl.BlockSpec((1, d_pad), lambda p, i, k: (0, 0)),      # b2
        ],
        # Phase 0 (layer 1) never writes the output; mapping to (i * p, 0)
        # pins the output block at (0, 0) until layer 2 starts, so each block
        # is visited exactly once in phase 1, fully overwritten at k == 0,
        # and written back lane-dense when its index changes.
        out_specs=pl.BlockSpec((tm, d_pad), lambda p, i, k: (i * p, 0)),
        scratch_shapes=[
            pltpu.VMEM((n_pad, d_pad), bf16),  # support = features @ W
            pltpu.VMEM((n_pad, d_pad), bf16),  # h1 = relu(gc1 output)
            pltpu.VMEM((tm, d_pad), f32),      # layer-1 row-tile accumulator
        ],
        compiler_params=pltpu.CompilerParams(
            # Row axis stays "arbitrary": layer 2 reads the full h1 scratch
            # produced by layer 1, so row tiles cannot be sharded across
            # TensorCores inside this fused call.
            # TODO(synk): on v7x (2 TCs) split the layers into two pallas_calls
            # so the row axis can be marked "parallel".
            dimension_semantics=("arbitrary", "arbitrary", "arbitrary"),
            vmem_limit_bytes=32 * 1024 * 1024,
        ),
        cost_estimate=pl.CostEstimate(
            flops=flops, transcendentals=0, bytes_accessed=bytes_accessed),
    )(adj_p, x_p, w1_p, b1_p, w2_p, b2_p)

    return out_p[:n, :nout]


if __name__ == "__main__":
    # Small GCN shapes implied by the module: N=200 nodes, nfeat=64,
    # nhid=32, output_dim=16.
    N, NFEAT, NHID, NOUT = 200, 64, 32, 16

    key = jax.random.PRNGKey(0)
    k_x, k_adj, k_w1, k_b1, k_w2, k_b2 = jax.random.split(key, 6)

    # reset_parameters(): stdv = 1/sqrt(out_features); uniform(-stdv, stdv).
    stdv1 = 1.0 / math.sqrt(NHID)
    stdv2 = 1.0 / math.sqrt(NOUT)
    w1 = jax.random.uniform(k_w1, (NFEAT, NHID), jnp.float32, -stdv1, stdv1)
    b1 = jax.random.uniform(k_b1, (NHID,), jnp.float32, -stdv1, stdv1)
    w2 = jax.random.uniform(k_w2, (NHID, NOUT), jnp.float32, -stdv2, stdv2)
    b2 = jax.random.uniform(k_b2, (NOUT,), jnp.float32, -stdv2, stdv2)

    x = jax.random.normal(k_x, (N, NFEAT), jnp.float32)
    adj = jax.random.uniform(k_adj, (N, N), jnp.float32) / N

    out = graph_net_forward(x, adj, w1, b1, w2, b2)
    out = jax.block_until_ready(out)

    # Reference: plain JAX (f32) Graph_Net forward.
    h1 = jnp.maximum(adj @ (x @ w1) + b1, 0.0)
    ref = adj @ (h1 @ w2) + b2

    assert out.shape == (N, NOUT)
    # bf16 MXU operands (f32 accumulation) -> relaxed tolerance vs f32 ref.
    assert jnp.allclose(out, ref, atol=2e-2, rtol=2e-2), "mismatch vs reference"

    print("KERNEL_OK")
</pallas_src>

<mosaic_0001>
module attributes {stable_mosaic.version = 11 : i64} {
  func.func @_graph_net_kernel(%arg0: i32, %arg1: i32, %arg2: i32, %arg3: memref<256x256xbf16, #tpu.memory_space<vmem>>, %arg4: memref<256x128xbf16, #tpu.memory_space<vmem>>, %arg5: memref<128x128xbf16, #tpu.memory_space<vmem>>, %arg6: memref<1x128xf32, #tpu.memory_space<vmem>>, %arg7: memref<128x128xbf16, #tpu.memory_space<vmem>>, %arg8: memref<1x128xf32, #tpu.memory_space<vmem>>, %arg9: memref<256x128xf32, #tpu.memory_space<vmem>>, %arg10: memref<256x128xbf16, #tpu.memory_space<vmem>>, %arg11: memref<256x128xbf16, #tpu.memory_space<vmem>>, %arg12: memref<256x128xf32, #tpu.memory_space<vmem>>) attributes {dimension_semantics = [#tpu.dimension_semantics<arbitrary>, #tpu.dimension_semantics<arbitrary>, #tpu.dimension_semantics<arbitrary>], iteration_bounds = array<i64: 2, 1, 1>, scalar_prefetch = 0 : i64, scratch_operands = 3 : i64, tpu.core_type = #tpu.core_type<tc>, window_params = [{transform_indices = @transform_0, window_bounds = array<i64: 256, 256>}, {transform_indices = @transform_1, window_bounds = array<i64: 256, 128>}, {pipeline_mode = #tpu.pipeline_mode<synchronous>, transform_indices = @transform_2, window_bounds = array<i64: 128, 128>}, {pipeline_mode = #tpu.pipeline_mode<synchronous>, transform_indices = @transform_3, window_bounds = array<i64: 1, 128>}, {pipeline_mode = #tpu.pipeline_mode<synchronous>, transform_indices = @transform_4, window_bounds = array<i64: 128, 128>}, {pipeline_mode = #tpu.pipeline_mode<synchronous>, transform_indices = @transform_5, window_bounds = array<i64: 1, 128>}, {transform_indices = @transform_6, window_bounds = array<i64: 256, 128>}]} {
    %c256_i32 = arith.constant 256 : i32
    %0 = arith.muli %arg2, %c256_i32 : i32
    %1 = tpu.assume_multiple %0, 256 : i32
    %c0_i32 = arith.constant 0 : i32
    %2 = arith.cmpi eq, %arg1, %c0_i32 : i32
    %3 = arith.extui %2 : i1 to i32
    %c0_i32_0 = arith.constant 0 : i32
    %4 = arith.cmpi ne, %3, %c0_i32_0 : i32
    scf.if %4 {
      %c0_i32_6 = arith.constant 0 : i32
      %15 = arith.cmpi eq, %arg0, %c0_i32_6 : i32
      %16 = arith.extui %15 : i1 to i32
      %c0_i32_7 = arith.constant 0 : i32
      %17 = arith.cmpi ne, %16, %c0_i32_7 : i32
      scf.if %17 {
        %c0_10 = arith.constant 0 : index
        %c0_11 = arith.constant 0 : index
        %21 = vector.load %arg4[%c0_10, %c0_11] : memref<256x128xbf16, #tpu.memory_space<vmem>>, vector<256x128xbf16>
        %c0_12 = arith.constant 0 : index
        %c0_13 = arith.constant 0 : index
        %22 = vector.load %arg5[%c0_12, %c0_13] : memref<128x128xbf16, #tpu.memory_space<vmem>>, vector<128x128xbf16>
        %cst_14 = arith.constant dense<0.000000e+00> : vector<256x128xf32>
        %23 = tpu.matmul %21, %22, %cst_14 {dimension_numbers = #tpu.dot_dimension_numbers<[1], [0], [0], [1], [0, 0, 1, 1], [], []>} : vector<256x128xbf16>, vector<128x128xbf16>, vector<256x128xf32> -> vector<256x128xf32>
        %24 = arith.truncf %23 : vector<256x128xf32> to vector<256x128xbf16>
        %25 = arith.index_cast %1 : i32 to index
        %c0_15 = arith.constant 0 : index
        %26 = vector.load %arg10[%25, %c0_15] : memref<256x128xbf16, #tpu.memory_space<vmem>>, vector<256x128xbf16>
        tpu.vector_store %arg10[%25, %c0_15], %24 {strides = array<i32>} : memref<256x128xbf16, #tpu.memory_space<vmem>>, vector<256x128xbf16>,
      } else {
      }
      %c1_i32_8 = arith.constant 1 : i32
      %18 = arith.cmpi eq, %arg0, %c1_i32_8 : i32
      %19 = arith.extui %18 : i1 to i32
      %c0_i32_9 = arith.constant 0 : i32
      %20 = arith.cmpi ne, %19, %c0_i32_9 : i32
      scf.if %20 {
        %21 = arith.index_cast %1 : i32 to index
        %c0_10 = arith.constant 0 : index
        %22 = vector.load %arg11[%21, %c0_10] : memref<256x128xbf16, #tpu.memory_space<vmem>>, vector<256x128xbf16>
        %c0_11 = arith.constant 0 : index
        %c0_12 = arith.constant 0 : index
        %23 = vector.load %arg7[%c0_11, %c0_12] : memref<128x128xbf16, #tpu.memory_space<vmem>>, vector<128x128xbf16>
        %cst_13 = arith.constant dense<0.000000e+00> : vector<256x128xf32>
        %24 = tpu.matmul %22, %23, %cst_13 {dimension_numbers = #tpu.dot_dimension_numbers<[1], [0], [0], [1], [0, 0, 1, 1], [], []>} : vector<256x128xbf16>, vector<128x128xbf16>, vector<256x128xf32> -> vector<256x128xf32>
        %25 = arith.truncf %24 : vector<256x128xf32> to vector<256x128xbf16>
        %26 = arith.index_cast %1 : i32 to index
        %c0_14 = arith.constant 0 : index
        %27 = vector.load %arg10[%26, %c0_14] : memref<256x128xbf16, #tpu.memory_space<vmem>>, vector<256x128xbf16>
        tpu.vector_store %arg10[%26, %c0_14], %25 {strides = array<i32>} : memref<256x128xbf16, #tpu.memory_space<vmem>>, vector<256x128xbf16>,
      } else {
      }
    } else {
    }
    %c0 = arith.constant 0 : index
    %c0_1 = arith.constant 0 : index
    %5 = vector.load %arg3[%c0, %c0_1] : memref<256x256xbf16, #tpu.memory_space<vmem>>, vector<256x256xbf16>
    %6 = arith.index_cast %1 : i32 to index
    %c0_2 = arith.constant 0 : index
    %7 = vector.load %arg10[%6, %c0_2] : memref<256x128xbf16, #tpu.memory_space<vmem>>, vector<256x128xbf16>
    %cst = arith.constant dense<0.000000e+00> : vector<256x128xf32>
    %8 = tpu.matmul %5, %7, %cst {dimension_numbers = #tpu.dot_dimension_numbers<[1], [0], [0], [1], [0, 0, 1, 1], [], []>} : vector<256x256xbf16>, vector<256x128xbf16>, vector<256x128xf32> -> vector<256x128xf32>
    %c0_i32_3 = arith.constant 0 : i32
    %9 = arith.cmpi eq, %arg0, %c0_i32_3 : i32
    %10 = arith.extui %9 : i1 to i32
    %c0_i32_4 = arith.constant 0 : i32
    %11 = arith.cmpi ne, %10, %c0_i32_4 : i32
    scf.if %11 {
      %c0_i32_6 = arith.constant 0 : i32
      %15 = arith.cmpi eq, %arg2, %c0_i32_6 : i32
      %16 = arith.extui %15 : i1 to i32
      %c0_i32_7 = arith.constant 0 : i32
      %17 = arith.cmpi ne, %16, %c0_i32_7 : i32
      scf.if %17 {
        %c0_12 = arith.constant 0 : index
        %c0_13 = arith.constant 0 : index
        %24 = vector.load %arg12[%c0_12, %c0_13] : memref<256x128xf32, #tpu.memory_space<vmem>>, vector<256x128xf32>
        tpu.vector_store %arg12[%c0_12, %c0_13], %8 {strides = array<i32>} : memref<256x128xf32, #tpu.memory_space<vmem>>, vector<256x128xf32>,
      } else {
      }
      %c0_i32_8 = arith.constant 0 : i32
      %18 = arith.cmpi ne, %arg2, %c0_i32_8 : i32
      %19 = arith.extui %18 : i1 to i32
      %c0_i32_9 = arith.constant 0 : i32
      %20 = arith.cmpi ne, %19, %c0_i32_9 : i32
      scf.if %20 {
        %c0_12 = arith.constant 0 : index
        %c0_13 = arith.constant 0 : index
        %24 = vector.load %arg12[%c0_12, %c0_13] : memref<256x128xf32, #tpu.memory_space<vmem>>, vector<256x128xf32>
        %25 = arith.addf %24, %8 : vector<256x128xf32>
        %c0_14 = arith.constant 0 : index
        %c0_15 = arith.constant 0 : index
        %26 = vector.load %arg12[%c0_14, %c0_15] : memref<256x128xf32, #tpu.memory_space<vmem>>, vector<256x128xf32>
        tpu.vector_store %arg12[%c0_14, %c0_15], %25 {strides = array<i32>} : memref<256x128xf32, #tpu.memory_space<vmem>>, vector<256x128xf32>,
      } else {
      }
      %c0_i32_10 = arith.constant 0 : i32
      %21 = arith.cmpi eq, %arg2, %c0_i32_10 : i32
      %22 = arith.extui %21 : i1 to i32
      %c0_i32_11 = arith.constant 0 : i32
      %23 = arith.cmpi ne, %22, %c0_i32_11 : i32
      scf.if %23 {
        %c256_i32_12 = arith.constant 256 : i32
        %24 = arith.muli %arg1, %c256_i32_12 : i32
        %25 = tpu.assume_multiple %24, 256 : i32
        %c0_13 = arith.constant 0 : index
        %c0_14 = arith.constant 0 : index
        %26 = vector.load %arg12[%c0_13, %c0_14] : memref<256x128xf32, #tpu.memory_space<vmem>>, vector<256x128xf32>
        %c0_15 = arith.constant 0 : index
        %c0_16 = arith.constant 0 : index
        %27 = vector.load %arg6[%c0_15, %c0_16] : memref<1x128xf32, #tpu.memory_space<vmem>>, vector<1x128xf32>
        %28 = vector.broadcast %27 : vector<1x128xf32> to vector<256x128xf32>
        %29 = arith.addf %26, %28 : vector<256x128xf32>
        %cst_17 = arith.constant 0.000000e+00 : f32
        %30 = vector.broadcast %cst_17 : f32 to vector<256x128xf32>
        %31 = arith.maximumf %29, %30 : vector<256x128xf32>
        %32 = arith.truncf %31 : vector<256x128xf32> to vector<256x128xbf16>
        %33 = arith.index_cast %25 : i32 to index
        %c0_18 = arith.constant 0 : index
        %34 = vector.load %arg11[%33, %c0_18] : memref<256x128xbf16, #tpu.memory_space<vmem>>, vector<256x128xbf16>
        tpu.vector_store %arg11[%33, %c0_18], %32 {strides = array<i32>} : memref<256x128xbf16, #tpu.memory_space<vmem>>, vector<256x128xbf16>,
      } else {
      }
    } else {
    }
    %c1_i32 = arith.constant 1 : i32
    %12 = arith.cmpi eq, %arg0, %c1_i32 : i32
    %13 = arith.extui %12 : i1 to i32
    %c0_i32_5 = arith.constant 0 : i32
    %14 = arith.cmpi ne, %13, %c0_i32_5 : i32
    scf.if %14 {
      %c0_i32_6 = arith.constant 0 : i32
      %15 = arith.cmpi eq, %arg2, %c0_i32_6 : i32
      %16 = arith.extui %15 : i1 to i32
      %c0_i32_7 = arith.constant 0 : i32
      %17 = arith.cmpi ne, %16, %c0_i32_7 : i32
      scf.if %17 {
        %c0_12 = arith.constant 0 : index
        %c0_13 = arith.constant 0 : index
        %24 = vector.load %arg9[%c0_12, %c0_13] : memref<256x128xf32, #tpu.memory_space<vmem>>, vector<256x128xf32>
        tpu.vector_store %arg9[%c0_12, %c0_13], %8 {strides = array<i32>} : memref<256x128xf32, #tpu.memory_space<vmem>>, vector<256x128xf32>,
      } else {
      }
      %c0_i32_8 = arith.constant 0 : i32
      %18 = arith.cmpi ne, %arg2, %c0_i32_8 : i32
      %19 = arith.extui %18 : i1 to i32
      %c0_i32_9 = arith.constant 0 : i32
      %20 = arith.cmpi ne, %19, %c0_i32_9 : i32
      scf.if %20 {
        %c0_12 = arith.constant 0 : index
        %c0_13 = arith.constant 0 : index
        %24 = vector.load %arg9[%c0_12, %c0_13] : memref<256x128xf32, #tpu.memory_space<vmem>>, vector<256x128xf32>
        %25 = arith.addf %24, %8 : vector<256x128xf32>
        %c0_14 = arith.constant 0 : index
        %c0_15 = arith.constant 0 : index
        %26 = vector.load %arg9[%c0_14, %c0_15] : memref<256x128xf32, #tpu.memory_space<vmem>>, vector<256x128xf32>
        tpu.vector_store %arg9[%c0_14, %c0_15], %25 {strides = array<i32>} : memref<256x128xf32, #tpu.memory_space<vmem>>, vector<256x128xf32>,
      } else {
      }
      %c0_i32_10 = arith.constant 0 : i32
      %21 = arith.cmpi eq, %arg2, %c0_i32_10 : i32
      %22 = arith.extui %21 : i1 to i32
      %c0_i32_11 = arith.constant 0 : i32
      %23 = arith.cmpi ne, %22, %c0_i32_11 : i32
      scf.if %23 {
        %c0_12 = arith.constant 0 : index
        %c0_13 = arith.constant 0 : index
        %24 = vector.load %arg9[%c0_12, %c0_13] : memref<256x128xf32, #tpu.memory_space<vmem>>, vector<256x128xf32>
        %c0_14 = arith.constant 0 : index
        %c0_15 = arith.constant 0 : index
        %25 = vector.load %arg8[%c0_14, %c0_15] : memref<1x128xf32, #tpu.memory_space<vmem>>, vector<1x128xf32>
        %26 = vector.broadcast %25 : vector<1x128xf32> to vector<256x128xf32>
        %27 = arith.addf %24, %26 : vector<256x128xf32>
        %c0_16 = arith.constant 0 : index
        %c0_17 = arith.constant 0 : index
        %28 = vector.load %arg9[%c0_16, %c0_17] : memref<256x128xf32, #tpu.memory_space<vmem>>, vector<256x128xf32>
        tpu.vector_store %arg9[%c0_16, %c0_17], %27 {strides = array<i32>} : memref<256x128xf32, #tpu.memory_space<vmem>>, vector<256x128xf32>,
      } else {
      }
    } else {
    }
    return
  }
  func.func @transform_0(%arg0: i32, %arg1: i32, %arg2: i32) -> (i32, i32) {
    %c0_i32 = arith.constant 0 : i32
    return %arg1, %arg2 : i32, i32
  }
  func.func @transform_1(%arg0: i32, %arg1: i32, %arg2: i32) -> (i32, i32) {
    %c0_i32 = arith.constant 0 : i32
    %0 = arith.cmpi eq, %arg0, %c0_i32 : i32
    %c0_i32_0 = arith.constant 0 : i32
    %1 = arith.cmpi eq, %arg1, %c0_i32_0 : i32
    %2 = arith.andi %0, %1 : i1
    %c0_i32_1 = arith.constant 0 : i32
    %3 = arith.select %2, %arg2, %c0_i32_1 : i32
    %c0_i32_2 = arith.constant 0 : i32
    %c0_i32_3 = arith.constant 0 : i32
    return %3, %c0_i32_2 : i32, i32
  }
  func.func @transform_2(%arg0: i32, %arg1: i32, %arg2: i32) -> (i32, i32) {
    %c0_i32 = arith.constant 0 : i32
    %c0_i32_0 = arith.constant 0 : i32
    %c0_i32_1 = arith.constant 0 : i32
    return %c0_i32, %c0_i32_0 : i32, i32
  }
  func.func @transform_3(%arg0: i32, %arg1: i32, %arg2: i32) -> (i32, i32) {
    %c0_i32 = arith.constant 0 : i32
    %c0_i32_0 = arith.constant 0 : i32
    %c0_i32_1 = arith.constant 0 : i32
    return %c0_i32, %c0_i32_0 : i32, i32
  }
  func.func @transform_4(%arg0: i32, %arg1: i32, %arg2: i32) -> (i32, i32) {
    %c0_i32 = arith.constant 0 : i32
    %c0_i32_0 = arith.constant 0 : i32
    %c0_i32_1 = arith.constant 0 : i32
    return %c0_i32, %c0_i32_0 : i32, i32
  }
  func.func @transform_5(%arg0: i32, %arg1: i32, %arg2: i32) -> (i32, i32) {
    %c0_i32 = arith.constant 0 : i32
    %c0_i32_0 = arith.constant 0 : i32
    %c0_i32_1 = arith.constant 0 : i32
    return %c0_i32, %c0_i32_0 : i32, i32
  }
  func.func @transform_6(%arg0: i32, %arg1: i32, %arg2: i32) -> (i32, i32) {
    %0 = arith.muli %arg1, %arg0 : i32
    %c0_i32 = arith.constant 0 : i32
    %c0_i32_0 = arith.constant 0 : i32
    return %0, %c0_i32 : i32, i32
  }
}

</mosaic_0001>

<bundles_post_ra>
// kernel: tpu_custom_call.1
= control target key start
LH: loop header
LB: loop body
LE: loop exit
PB: predicated region body
PF: predicated region fallthrough
CT: control target
= control target key end

     0   :  { %11 = vsyncpa [#allocation6], 0  ;;  %s3255_s0 = inlined_call_operand.hbm [shape: bf16[256,256], index: 0, kind: input, shape index: {}]   ;;  %s3256_s1 = inlined_call_operand.hbm [shape: bf16[256,128], index: 1, kind: input, shape index: {}]   ;;  %s3257_s2 = inlined_call_operand.hbm [shape: bf16[128,128], index: 2, kind: input, shape index: {}]   ;;  %s3258_s3 = inlined_call_operand.vmem [shape: f32[1,128], index: 3, kind: input, shape index: {}]   ;;  %s3259_s4 = inlined_call_operand.hbm [shape: bf16[128,128], index: 4, kind: input, shape index: {}]   ;;  %s3260_s5 = inlined_call_operand.vmem [shape: f32[1,128], index: 5, kind: input, shape index: {}]   ;;  %s3261_s6 = inlined_call_operand.hbm [shape: f32[256,128], index: 6, kind: output, shape index: {}]  }
   0x1   :  { %12 = vsyncpa [#allocation9], 0 }
   0x2   :  { %14 = vsyncpa [#allocation9 + $0x1], 0 }
   0x3   :  { %15 = vsyncpa [#allocation12], 0 }
   0x4   :  { %16 = vsyncpa [#allocation7], 0 }
   0x5   :  { %18 = vsyncpa [#allocation7 + $0x1], 0  ;;  %s2892_s21 = smov 0   ;;  %s2894_s22 = smov 0  }
   0x6   :  { %s2896_s23 = smov 0  }
   0x7 LB: > { %s2846_s24 = smov [#allocation10]   ;;  %s2908_s26 = sadd.s32 4294967295, %s2844_s23   ;;  %s2844_s23 = sphi %s2896_s23, %s24_s23   ;;  %s2840_s22 = sphi %s2894_s22, %s3282_s22   ;;  %s2836_s21 = sphi %s2892_s21, %s3281_s21  }
   0x8   : > { %s255_s25 = sshll.u32 %s2846_s24, 4  ;;  %p2106_p0 = scmp.ge.s32.totalorder %s2844_s23, 1  ;;  %s256_s25 = int_to_ptr.vmem [resolvable:$true] %s255_s25 }
   0x9   : > { %p224_p1 = scmp.lt.s32.totalorder %s2844_s23, 3  ;;  %p3262_p2 = scmp.eq.s32.totalorder %s2908_s26, 0 }
   0xa   : > { %s43_s30 = sadd.s32 1, %s2840_s22  ;;  %s2664_s9 = scalar_lea.hbm %s3257_s2, 1024 }
   0xb   : > { %p2914_p3 = pnand %p2106_p0, %p224_p1  ;;  %p2665_p7 = scmp.ne.s32.totalorder %s3257_s2, %s2664_s9 }
   0xc   : > { %p2671_p11 = scmp.lt.u32.totalorder %s2664_s9, %s3257_s2 }
   0xd   : > { %s3264_s28 = scalar_select %p2914_p3, 1, 0 }
   0xe   : > { %p2519_p4 = pneg %p2914_p3 }
  0x10   : > { %p2923_p6 = pnand %p3262_p2, %p2519_p4 }
  0x12   : > { %p2936_p8 = pneg %p2923_p6 }
  0x14   : > { %p2667_p9 = pnand %p2936_p8, %p2665_p7 }
  0x16   : > { %p2668_p10 = pneg %p2667_p9 }
  0x18   : > { %p2673_p12 = pnand %p2671_p11, %p2668_p10 }
  0x1a   : > { %2676 = shalt.err (!%p2673_p12)
}
  0x1b   : > { %s2677_s15 = scalar_lea.vmem %s256_s25, 1024  ;;  %p2685_p4 = scmp.lt.s32.totalorder %s256_s25, %s256_s25 }
  0x1c   : > { %p2678_p13 = scmp.ne.s32.totalorder %s256_s25, %s2677_s15  ;;  %p2686_p5 = scmp.lt.s32.totalorder %s2677_s15, %s2677_s15 }
  0x1e   : > { %p2680_p0 = pnand %p2678_p13, %p2936_p8  ;;  %p2687_p2 = por %p2686_p5, %p2685_p4 }
  0x20   : > { %p2681_p1 = pneg %p2680_p0 }
  0x22   : > { %p2688_p3 = pnand %p2687_p2, %p2681_p1 }
  0x24   : > { %2691 = shalt.err (!%p2688_p3)
}
  0x25   : > { %s2847_s16 = smov 64   ;;  %s2848_s17 = smov 4  }
  0x26   : > { %2525 = dma.hbm_to_vmem [thread:$0]  (!%p2923_p6), %s3257_s2, 1024, %s256_s25, [#allocation9], %s2847_s16, %s2847_s16, %s2848_s17  }
  0x27   : > { %p45_p7 = scmp.ge.s32.totalorder %s43_s30, 2  ;;  %s2849_s20 = smov [#allocation5]  }
  0x28   : > { %s242_s24 = sshll.u32 %s2849_s20, 4  ;;  %s2692_s9 = scalar_lea.hbm %s3255_s0, 4096  ;;  %s243_s24 = int_to_ptr.vmem [resolvable:$true] %s242_s24 }
  0x29   : > { %s3284_s30 = smov (%p45_p7, %s43_s30), 0  ;;  %p2693_p2 = scmp.ne.s32.totalorder %s3255_s0, %s2692_s9 }
  0x2a   : > { %p2699_p9 = scmp.lt.u32.totalorder %s2692_s9, %s3255_s0 }
  0x2b   : > { %p2695_p3 = pnand %p2693_p2, %p2936_p8 }
  0x2d   : > { %p2696_p5 = pneg %p2695_p3 }
  0x2f   : > { %p2701_p10 = pnand %p2699_p9, %p2696_p5 }
  0x31   : > { %2704 = shalt.err (!%p2701_p10)
}
  0x32   : > { %s2705_s25 = scalar_lea.vmem %s243_s24, 4096  ;;  %p2713_p0 = scmp.lt.s32.totalorder %s243_s24, %s243_s24 }
  0x33   : > { %p2706_p11 = scmp.ne.s32.totalorder %s243_s24, %s2705_s25  ;;  %p2714_p1 = scmp.lt.s32.totalorder %s2705_s25, %s2705_s25 }
  0x35   : > { %p2708_p12 = pnand %p2706_p11, %p2936_p8  ;;  %p2715_p4 = por %p2714_p1, %p2713_p0 }
  0x37   : > { %p2709_p13 = pneg %p2708_p12 }
  0x39   : > { %p2716_p7 = pnand %p2715_p4, %p2709_p13 }
  0x3b   : > { %2719 = shalt.err (!%p2716_p7)
}
  0x3c   : > { %s2850_s15 = smov 128   ;;  %s2851_s18 = smov 8  }
  0x3d   : > { %2522 = dma.hbm_to_vmem [thread:$0]  (!%p2923_p6), %s3255_s0, 4096, %s243_s24, [#allocation6], %s2850_s15, %s2850_s15, %s2851_s18  }
  0x3e   : > { %s2852_s7 = smov [#allocation11]   ;;  %s288_s9 = sand.u32 1, %s2844_s23  }
  0x3f   : > { %s271_s8 = sshll.u32 %s2852_s7, 4  ;;  %s2720_s13 = scalar_lea.hbm %s3259_s4, 1024  ;;  %s272_s8 = int_to_ptr.vmem [resolvable:$true] %s271_s8 }
  0x40   : > { %p2721_p5 = scmp.ne.s32.totalorder %s3259_s4, %s2720_s13  ;;  %p2727_p11 = scmp.lt.u32.totalorder %s2720_s13, %s3259_s4 }
  0x42   : > { %p2723_p9 = pnand %p2721_p5, %p2936_p8 }
  0x44   : > { %p2724_p10 = pneg %p2723_p9 }
  0x46   : > { %p2729_p12 = pnand %p2727_p11, %p2724_p10 }
  0x48   : > { %2732 = shalt.err (!%p2729_p12)
}
  0x49   : > { %s2733_s24 = scalar_lea.vmem %s272_s8, 1024  ;;  %p2741_p4 = scmp.lt.s32.totalorder %s272_s8, %s272_s8 }
  0x4a   : > { %p2734_p13 = scmp.ne.s32.totalorder %s272_s8, %s2733_s24  ;;  %p2742_p7 = scmp.lt.s32.totalorder %s2733_s24, %s2733_s24 }
  0x4c   : > { %p2736_p0 = pnand %p2734_p13, %p2936_p8  ;;  %p2743_p3 = por %p2742_p7, %p2741_p4 }
  0x4e   : > { %p2737_p1 = pneg %p2736_p0 }
  0x50   : > { %p2744_p2 = pnand %p2743_p3, %p2737_p1 }
  0x52   : > { %2747 = shalt.err (!%p2744_p2)
}
  0x53   : > { %2528 = dma.hbm_to_vmem [thread:$0]  (!%p2923_p6), %s3259_s4, 1024, %s272_s8, [#allocation12], %s2847_s16, %s2847_s16, %s2848_s17  }
  0x54   : > { %s2853_s18 = smov [#allocation8]   ;;  %p3267_p8 = scmp.lt.s32.totalorder %s2844_s23, 2 }
  0x55   : > { %s304_s12 = sshll.u32 %s2853_s18, 4  ;;  %p3268_p5 = scmp.eq.s32.totalorder %s2844_s23, 0  ;;  %s305_s12 = int_to_ptr.vmem [resolvable:$true] %s304_s12 }
  0x56   : > { %s289_s29 = scalar_lea.sflag [#allocation9], %s288_s9  ;;  %s2748_s11 = scalar_lea.hbm %s3256_s1, 2048 }
  0x57   : > { %p3003_p9 = pnand %p3268_p5, %p3267_p8  ;;  %p2749_p2 = scmp.ne.s32.totalorder %s3256_s1, %s2748_s11 }
  0x58   : > { %p2755_p11 = scmp.lt.u32.totalorder %s2748_s11, %s3256_s1 }
  0x59   : > { %p2750_p6 = pneg %p3003_p9 }
  0x5b   : > { %p2751_p3 = pnand %p2750_p6, %p2749_p2 }
  0x5d   : > { %p2752_p10 = pneg %p2751_p3 }
  0x5f   : > { %p2757_p12 = pnand %p2755_p11, %p2752_p10 }
  0x61   : > { %2760 = shalt.err (!%p2757_p12)
}
  0x62   : > { %s2761_s19 = scalar_lea.vmem %s305_s12, 2048  ;;  %s2768_s9 = scalar_lea.vmem %s305_s12, 4096 }
  0x63   : > { %p2762_p13 = scmp.ne.s32.totalorder %s305_s12, %s2761_s19  ;;  %p2769_p4 = scmp.lt.s32.totalorder %s305_s12, %s305_s12 }
  0x64   : > { %p2770_p7 = scmp.lt.s32.totalorder %s2768_s9, %s2761_s19 }
  0x65   : > { %p2764_p0 = pnand %p2762_p13, %p2750_p6 }
  0x66   : > { %p2771_p8 = por %p2770_p7, %p2769_p4 }
  0x67   : > { %p2765_p1 = pneg %p2764_p0 }
  0x69   : > { %p2772_p5 = pnand %p2771_p8, %p2765_p1 }
  0x6b   : > { %2775 = shalt.err (!%p2772_p5)
}
  0x6c   : > { %2532 = dma.hbm_to_vmem [thread:$0]  (!%p3003_p9), %s3256_s1, 2048, %s305_s12, %s289_s29, %s2847_s16, %s2847_s16, %s2848_s17  }
  0x6d   : > { %p3270_p2 = scmp.ne.s32.totalorder %s3264_s28, 0 }
  0x6e   : > { %p3271_p6 = scmp.eq.s32.totalorder (!%p3270_p2), %s2908_s26, 0 }
  0x6f   : > { %316 = sbr.rel (%p3270_p2) target bundleno = 1042 (0x412), region = 44 }
  0x76   : > { %2815 = dma.done.wait (%p3271_p6), [#allocation6], 4096   ;;  %p3272_p3 = pmov %p3271_p6 }
  0x77   : > { %s322_s15 = sand.u32 1, %s2908_s26  }
  0x78   : > { %2817 = vsyncadd (%p3272_p3), [#allocation6], 4294963200  ;;  %s323_s18 = scalar_lea.sflag [#allocation9], %s322_s15  ;;  %p3273_p10 = pmov %p3272_p3 }
  0x79   : > { %p3274_p11 = pmov %p3272_p3 }
  0x7a   : > { %2819 = dma.done.wait (%p3273_p10), %s323_s18, 2048  }
  0x7b   : > { %2821 = vsyncadd (%p3274_p11), %s323_s18, 4294965248  ;;  %p3275_p9 = pmov %p3272_p3 }
  0x7c   : > { %p3276_p12 = pmov %p3272_p3 }
  0x7d   : > { %2823 = dma.done.wait (%p3275_p9), [#allocation9], 1024  }
  0x7e   : > { %2825 = vsyncadd (%p3276_p12), [#allocation9], 4294966272  ;;  %p3277_p13 = pmov %p3272_p3 }
  0x7f   : > { %p3278_p0 = pmov %p3272_p3 }
  0x80   : > { %2827 = dma.done.wait (%p3277_p13), [#allocation12], 1024  }
  0x81   : > { %2829 = vsyncadd (%p3278_p0), [#allocation12], 4294966272  ;;  %p2118_p1 = scmp.ne.s32.totalorder %s2836_s21, 0 }
  0x82   : > { %v2584_v0 = vld [vmem:[#allocation10] sm:$0xff] (!%p2118_p1)   ;;  %v2585_v1 = vld [vmem:[#allocation10 + $0x8] sm:$0xff] (!%p2118_p1)   ;;  %v2586_v2 = vld [vmem:[#allocation10 + $0x10] sm:$0xff] (!%p2118_p1)  }
  0x83   : > { %382 = sbr.rel (%p2118_p1) target bundleno = 405 (0x195), region = 68  ;;  %2355 = vmatprep.subr.bf16.mxu0 (!%p2118_p1), %v2584_v0  ;;  %2451 = vmatprep.subr.bf16.mxu1 (!%p2118_p1), %v2584_v0  ;;  %v2587_v3 = vld [vmem:[#allocation10 + $0x18] sm:$0xff] (!%p2118_p1)   ;;  %v2592_v4 = vld [vmem:[#allocation8] sm:$0xff] (!%p2118_p1)   ;;  %v2589_v7 = vld [vmem:[#allocation10 + $0x28] sm:$0xff] (!%p2118_p1)  }
  0x84   : > { %2356 = vmatpush3.bf16.msra.mxu0 (!%p2118_p1), %v2584_v0  ;;  %2459 = vmatpush3.bf16.msra.mxu1 (!%p2118_p1), %v2584_v0  ;;  %v2593_v5 = vld [vmem:[#allocation8 + $0x40] sm:$0xff] (!%p2118_p1)   ;;  %v2590_v8 = vld [vmem:[#allocation10 + $0x30] sm:$0xff] (!%p2118_p1)   ;;  %v2591_v9 = vld [vmem:[#allocation10 + $0x38] sm:$0xff] (!%p2118_p1)  }
  0x85   : > { %2357 = vmatprep.subr.bf16.mxu0 (!%p2118_p1), %v2585_v1  ;;  %2452 = vmatprep.subr.bf16.mxu1 (!%p2118_p1), %v2585_v1  ;;  %v2588_v6 = vld [vmem:[#allocation10 + $0x20] sm:$0xff] (!%p2118_p1)   ;;  %v2594_v10 = vld [vmem:[#allocation8 + $0x8] sm:$0xff] (!%p2118_p1)   ;;  %v2596_v12 = vld [vmem:[#allocation8 + $0x10] sm:$0xff] (!%p2118_p1)  }
  0x86   : > { %2371 = vmatprep.mubr.bf16.mxu0 (!%p2118_p1), %v2592_v4  ;;  %2387 = vmatprep.mubr.bf16.mxu1 (!%p2118_p1), %v2593_v5  ;;  %v2595_v11 = vld [vmem:[#allocation8 + $0x48] sm:$0xff] (!%p2118_p1)   ;;  %v2597_v13 = vld [vmem:[#allocation8 + $0x50] sm:$0xff] (!%p2118_p1)   ;;  %v2598_v14 = vld [vmem:[#allocation8 + $0x18] sm:$0xff] (!%p2118_p1)  }
  0x87   : > { %v2599_v15 = vld [vmem:[#allocation8 + $0x58] sm:$0xff] (!%p2118_p1)   ;;  %v2600_v16 = vld [vmem:[#allocation8 + $0x20] sm:$0xff] (!%p2118_p1)   ;;  %v2602_v18 = vld [vmem:[#allocation8 + $0x28] sm:$0xff] (!%p2118_p1)  }
  0x88   : > { %2358 = vmatpush3.bf16.msra.mxu0 (!%p2118_p1), %v2585_v1  ;;  %2460 = vmatpush3.bf16.msra.mxu1 (!%p2118_p1), %v2585_v1  ;;  %v2601_v17 = vld [vmem:[#allocation8 + $0x60] sm:$0xff] (!%p2118_p1)   ;;  %v2603_v19 = vld [vmem:[#allocation8 + $0x68] sm:$0xff] (!%p2118_p1)   ;;  %v2604_v20 = vld [vmem:[#allocation8 + $0x30] sm:$0xff] (!%p2118_p1)  }
  0x89   : > { %2359 = vmatprep.subr.bf16.mxu0 (!%p2118_p1), %v2586_v2  ;;  %2453 = vmatprep.subr.bf16.mxu1 (!%p2118_p1), %v2586_v2  ;;  %v2605_v21 = vld [vmem:[#allocation8 + $0x70] sm:$0xff] (!%p2118_p1)   ;;  %v2606_v22 = vld [vmem:[#allocation8 + $0x38] sm:$0xff] (!%p2118_p1)  }
  0x8a   : > { %v2607_v23 = vld [vmem:[#allocation8 + $0x78] sm:$0xff]  }
  0x8c   : > { %2360 = vmatpush3.bf16.msra.mxu0 %v2586_v2  ;;  %2461 = vmatpush3.bf16.msra.mxu1 %v2586_v2 }
  0x8d   : > { %2361 = vmatprep.subr.bf16.mxu0 %v2587_v3  ;;  %2454 = vmatprep.subr.bf16.mxu1 %v2587_v3 }
  0x90   : > { %2362 = vmatpush3.bf16.msra.mxu0 %v2587_v3  ;;  %2462 = vmatpush3.bf16.msra.mxu1 %v2587_v3 }
  0x91   : > { %2363 = vmatprep.subr.bf16.mxu0 %v2588_v6  ;;  %2455 = vmatprep.subr.bf16.mxu1 %v2588_v6 }
  0x94   : > { %2364 = vmatpush3.bf16.msra.mxu0 %v2588_v6  ;;  %2463 = vmatpush3.bf16.msra.mxu1 %v2588_v6 }
  0x95   : > { %2365 = vmatprep.subr.bf16.mxu0 %v2589_v7  ;;  %2456 = vmatprep.subr.bf16.mxu1 %v2589_v7 }
  0x98   : > { %2366 = vmatpush3.bf16.msra.mxu0 %v2589_v7  ;;  %2464 = vmatpush3.bf16.msra.mxu1 %v2589_v7 }
  0x99   : > { %2367 = vmatprep.subr.bf16.mxu0 %v2590_v8  ;;  %2457 = vmatprep.subr.bf16.mxu1 %v2590_v8 }
  0x9c   : > { %2368 = vmatpush3.bf16.msra.mxu0 %v2590_v8  ;;  %2465 = vmatpush3.bf16.msra.mxu1 %v2590_v8 }
  0x9d   : > { %2369 = vmatprep.subr.bf16.mxu0 %v2591_v9  ;;  %2458 = vmatprep.subr.bf16.mxu1 %v2591_v9 }
  0xa0   : > { %2370 = vmatpush3.bf16.msra.mxu0 %v2591_v9  ;;  %2466 = vmatpush3.bf16.msra.mxu1 %v2591_v9 }
  0xa3   : > { %2372 = vmatmul.mubr.bf16.vlgmr.msra.gmra.mrb[0].mxu0 %v2594_v10  ;;  %2388 = vmatmul.mubr.bf16.vlgmr.msra.gmra.mrb[0].mxu1 %v2595_v11 }
  0xa4   : > { %2375 = vmatprep.mubr.bf16.mxu0 %v2596_v12  ;;  %2391 = vmatprep.mubr.bf16.mxu1 %v2597_v13 }
  0xab   : > { %2376 = vmatmul.mubr.bf16.gmra.mrb[4].mxu0 %v2598_v14  ;;  %2392 = vmatmul.mubr.bf16.gmra.mrb[4].mxu1 %v2599_v15 }
  0xac   : > { %2379 = vmatprep.mubr.bf16.mxu0 %v2600_v16  ;;  %2395 = vmatprep.mubr.bf16.mxu1 %v2601_v17 }
  0xb3   : > { %2380 = vmatmul.mubr.bf16.gmra.mrb[8].mxu0 %v2602_v18  ;;  %2396 = vmatmul.mubr.bf16.gmra.mrb[8].mxu1 %v2603_v19 }
  0xb4   : > { %2383 = vmatprep.mubr.bf16.mxu0 %v2604_v20  ;;  %2399 = vmatprep.mubr.bf16.mxu1 %v2605_v21 }
  0xbb   : > { %2384 = vmatmul.mubr.bf16.gmra.mrb[12].mxu0 %v2606_v22  ;;  %2400 = vmatmul.mubr.bf16.gmra.mrb[12].mxu1 %v2607_v23 }
 0x176   : > { %v2373_v24 = vpop.f32.mrb[0].mxu0  ;;  %v2389_v25 = vpop.f32.mrb[0].mxu1 }
 0x177   : > { %v609_v26 = vpop.f32.mrb[1].mxu0  ;;  %v673_v27 = vpop.f32.mrb[1].mxu1 }
 0x178   : > { %v2374_v28 = vpop.f32.mrb[2].mxu0  ;;  %v2390_v29 = vpop.f32.mrb[2].mxu1 }
 0x179   : > { %v737_v30 = vpack.c.bf16 %v2374_v28, %v2373_v24  ;;  %v745_v31 = vpack.c.bf16 %v2390_v29, %v2389_v25  ;;  %v612_v32 = vpop.f32.mrb[3].mxu0  ;;  %v676_v33 = vpop.f32.mrb[3].mxu1 }
 0x17a   : > { %v736_v34 = vpack.c.bf16 %v612_v32, %v609_v26  ;;  %v744_v35 = vpack.c.bf16 %v676_v33, %v673_v27 }
 0x17b   : > { %757 = vst [vmem:[#allocation2 + $0x8] sm:$0xff] %v737_v30  ;;  %765 = vst [vmem:[#allocation2 + $0x48] sm:$0xff] %v745_v31 }
 0x17c   : > { %756 = vst [vmem:[#allocation2] sm:$0xff] %v736_v34  ;;  %764 = vst [vmem:[#allocation2 + $0x40] sm:$0xff] %v744_v35 }
 0x17e   : > { %v2377_v36 = vpop.f32.mrb[4].mxu0  ;;  %v2393_v37 = vpop.f32.mrb[4].mxu1 }
 0x17f   : > { %v625_v38 = vpop.f32.mrb[5].mxu0  ;;  %v689_v39 = vpop.f32.mrb[5].mxu1 }
 0x180   : > { %v2378_v40 = vpop.f32.mrb[6].mxu0  ;;  %v2394_v41 = vpop.f32.mrb[6].mxu1 }
 0x181   : > { %v739_v42 = vpack.c.bf16 %v2378_v40, %v2377_v36  ;;  %v747_v43 = vpack.c.bf16 %v2394_v41, %v2393_v37  ;;  %v628_v44 = vpop.f32.mrb[7].mxu0  ;;  %v692_v45 = vpop.f32.mrb[7].mxu1 }
 0x182   : > { %v738_v46 = vpack.c.bf16 %v628_v44, %v625_v38  ;;  %v746_v47 = vpack.c.bf16 %v692_v45, %v689_v39 }
 0x183   : > { %759 = vst [vmem:[#allocation2 + $0x18] sm:$0xff] %v739_v42  ;;  %767 = vst [vmem:[#allocation2 + $0x58] sm:$0xff] %v747_v43 }
 0x184   : > { %758 = vst [vmem:[#allocation2 + $0x10] sm:$0xff] %v738_v46  ;;  %766 = vst [vmem:[#allocation2 + $0x50] sm:$0xff] %v746_v47 }
 0x186   : > { %v2381_v48 = vpop.f32.mrb[8].mxu0  ;;  %v2397_v49 = vpop.f32.mrb[8].mxu1 }
 0x187   : > { %v641_v50 = vpop.f32.mrb[9].mxu0  ;;  %v705_v51 = vpop.f32.mrb[9].mxu1 }
 0x188   : > { %v2382_v52 = vpop.f32.mrb[10].mxu0  ;;  %v2398_v53 = vpop.f32.mrb[10].mxu1 }
 0x189   : > { %v741_v54 = vpack.c.bf16 %v2382_v52, %v2381_v48  ;;  %v749_v55 = vpack.c.bf16 %v2398_v53, %v2397_v49  ;;  %v644_v56 = vpop.f32.mrb[11].mxu0  ;;  %v708_v57 = vpop.f32.mrb[11].mxu1 }
 0x18a   : > { %v740_v58 = vpack.c.bf16 %v644_v56, %v641_v50  ;;  %v748_v59 = vpack.c.bf16 %v708_v57, %v705_v51 }
 0x18b   : > { %761 = vst [vmem:[#allocation2 + $0x28] sm:$0xff] %v741_v54  ;;  %769 = vst [vmem:[#allocation2 + $0x68] sm:$0xff] %v749_v55 }
 0x18c   : > { %760 = vst [vmem:[#allocation2 + $0x20] sm:$0xff] %v740_v58  ;;  %768 = vst [vmem:[#allocation2 + $0x60] sm:$0xff] %v748_v59 }
 0x18e   : > { %v2385_v60 = vpop.f32.mrb[12].mxu0  ;;  %v2401_v61 = vpop.f32.mrb[12].mxu1 }
 0x18f   : > { %v657_v62 = vpop.f32.mrb[13].mxu0  ;;  %v721_v63 = vpop.f32.mrb[13].mxu1 }
 0x190   : > { %v2386_v0 = vpop.f32.mrb[14].mxu0  ;;  %v2402_v1 = vpop.f32.mrb[14].mxu1 }
 0x191   : > { %v743_v2 = vpack.c.bf16 %v2386_v0, %v2385_v60  ;;  %v751_v3 = vpack.c.bf16 %v2402_v1, %v2401_v61  ;;  %v660_v4 = vpop.f32.mrb[15].mxu0  ;;  %v724_v5 = vpop.f32.mrb[15].mxu1 }
 0x192   : > { %v742_v6 = vpack.c.bf16 %v660_v4, %v657_v62  ;;  %v750_v7 = vpack.c.bf16 %v724_v5, %v721_v63 }
 0x193   : > { %763 = vst [vmem:[#allocation2 + $0x38] sm:$0xff] %v743_v2  ;;  %771 = vst [vmem:[#allocation2 + $0x78] sm:$0xff] %v751_v3 }
 0x194   : > { %762 = vst [vmem:[#allocation2 + $0x30] sm:$0xff] %v742_v6  ;;  %770 = vst [vmem:[#allocation2 + $0x70] sm:$0xff] %v750_v7 }
 0x195 PF: > { %p2143_p4 = scmp.ne.s32.totalorder %s2836_s21, 1 }
 0x196   : > { %v2608_v8 = vld [vmem:[#allocation11] sm:$0xff] (!%p2143_p4)   ;;  %v2609_v9 = vld [vmem:[#allocation11 + $0x8] sm:$0xff] (!%p2143_p4)   ;;  %v2610_v10 = vld [vmem:[#allocation11 + $0x10] sm:$0xff] (!%p2143_p4)  }
 0x197   : > { %775 = sbr.rel (%p2143_p4) target bundleno = 681 (0x2a9), region = 72  ;;  %2403 = vmatprep.subr.bf16.mxu0 (!%p2143_p4), %v2608_v8  ;;  %2467 = vmatprep.subr.bf16.mxu1 (!%p2143_p4), %v2608_v8  ;;  %v2611_v11 = vld [vmem:[#allocation11 + $0x18] sm:$0xff] (!%p2143_p4)   ;;  %v780_v12 = vld [vmem:[#allocation3] sm:$0xff] (!%p2143_p4)  ;;  %v2613_v15 = vld [vmem:[#allocation11 + $0x28] sm:$0xff] (!%p2143_p4)  }
 0x198   : > { %2404 = vmatpush3.bf16.msra.mxu0 (!%p2143_p4), %v2608_v8  ;;  %2475 = vmatpush3.bf16.msra.mxu1 (!%p2143_p4), %v2608_v8  ;;  %v788_v13 = vld [vmem:[#allocation3 + $0x40] sm:$0xff] (!%p2143_p4)  ;;  %v2614_v16 = vld [vmem:[#allocation11 + $0x30] sm:$0xff] (!%p2143_p4)   ;;  %v2615_v17 = vld [vmem:[#allocation11 + $0x38] sm:$0xff] (!%p2143_p4)  }
 0x199   : > { %2405 = vmatprep.subr.bf16.mxu0 (!%p2143_p4), %v2609_v9  ;;  %2468 = vmatprep.subr.bf16.mxu1 (!%p2143_p4), %v2609_v9  ;;  %v2612_v14 = vld [vmem:[#allocation11 + $0x20] sm:$0xff] (!%p2143_p4)   ;;  %v781_v18 = vld [vmem:[#allocation3 + $0x8] sm:$0xff] (!%p2143_p4)  ;;  %v782_v20 = vld [vmem:[#allocation3 + $0x10] sm:$0xff] (!%p2143_p4) }
 0x19a   : > { %2419 = vmatprep.mubr.bf16.mxu0 (!%p2143_p4), %v780_v12  ;;  %2435 = vmatprep.mubr.bf16.mxu1 (!%p2143_p4), %v788_v13  ;;  %v789_v19 = vld [vmem:[#allocation3 + $0x48] sm:$0xff] (!%p2143_p4)  ;;  %v790_v21 = vld [vmem:[#allocation3 + $0x50] sm:$0xff] (!%p2143_p4)  ;;  %v783_v22 = vld [vmem:[#allocation3 + $0x18] sm:$0xff] (!%p2143_p4) }
 0x19b   : > { %v791_v23 = vld [vmem:[#allocation3 + $0x58] sm:$0xff] (!%p2143_p4)  ;;  %v784_v24 = vld [vmem:[#allocation3 + $0x20] sm:$0xff] (!%p2143_p4)  ;;  %v785_v26 = vld [vmem:[#allocation3 + $0x28] sm:$0xff] (!%p2143_p4) }
 0x19c   : > { %2406 = vmatpush3.bf16.msra.mxu0 (!%p2143_p4), %v2609_v9  ;;  %2476 = vmatpush3.bf16.msra.mxu1 (!%p2143_p4), %v2609_v9  ;;  %v792_v25 = vld [vmem:[#allocation3 + $0x60] sm:$0xff] (!%p2143_p4)  ;;  %v793_v27 = vld [vmem:[#allocation3 + $0x68] sm:$0xff] (!%p2143_p4)  ;;  %v786_v28 = vld [vmem:[#allocation3 + $0x30] sm:$0xff] (!%p2143_p4) }
 0x19d   : > { %2407 = vmatprep.subr.bf16.mxu0 (!%p2143_p4), %v2610_v10  ;;  %2469 = vmatprep.subr.bf16.mxu1 (!%p2143_p4), %v2610_v10  ;;  %v794_v29 = vld [vmem:[#allocation3 + $0x70] sm:$0xff] (!%p2143_p4)  ;;  %v787_v30 = vld [vmem:[#allocation3 + $0x38] sm:$0xff] (!%p2143_p4) }
 0x19e   : > { %v795_v31 = vld [vmem:[#allocation3 + $0x78] sm:$0xff] }
 0x1a0   : > { %2408 = vmatpush3.bf16.msra.mxu0 %v2610_v10  ;;  %2477 = vmatpush3.bf16.msra.mxu1 %v2610_v10 }
 0x1a1   : > { %2409 = vmatprep.subr.bf16.mxu0 %v2611_v11  ;;  %2470 = vmatprep.subr.bf16.mxu1 %v2611_v11 }
 0x1a4   : > { %2410 = vmatpush3.bf16.msra.mxu0 %v2611_v11  ;;  %2478 = vmatpush3.bf16.msra.mxu1 %v2611_v11 }
 0x1a5   : > { %2411 = vmatprep.subr.bf16.mxu0 %v2612_v14  ;;  %2471 = vmatprep.subr.bf16.mxu1 %v2612_v14 }
 0x1a8   : > { %2412 = vmatpush3.bf16.msra.mxu0 %v2612_v14  ;;  %2479 = vmatpush3.bf16.msra.mxu1 %v2612_v14 }
 0x1a9   : > { %2413 = vmatprep.subr.bf16.mxu0 %v2613_v15  ;;  %2472 = vmatprep.subr.bf16.mxu1 %v2613_v15 }
 0x1ac   : > { %2414 = vmatpush3.bf16.msra.mxu0 %v2613_v15  ;;  %2480 = vmatpush3.bf16.msra.mxu1 %v2613_v15 }
 0x1ad   : > { %2415 = vmatprep.subr.bf16.mxu0 %v2614_v16  ;;  %2473 = vmatprep.subr.bf16.mxu1 %v2614_v16 }
 0x1b0   : > { %2416 = vmatpush3.bf16.msra.mxu0 %v2614_v16  ;;  %2481 = vmatpush3.bf16.msra.mxu1 %v2614_v16 }
 0x1b1   : > { %2417 = vmatprep.subr.bf16.mxu0 %v2615_v17  ;;  %2474 = vmatprep.subr.bf16.mxu1 %v2615_v17 }
 0x1b4   : > { %2418 = vmatpush3.bf16.msra.mxu0 %v2615_v17  ;;  %2482 = vmatpush3.bf16.msra.mxu1 %v2615_v17 }
 0x1b7   : > { %2420 = vmatmul.mubr.bf16.vlgmr.msra.gmra.mrb[0].mxu0 %v781_v18  ;;  %2436 = vmatmul.mubr.bf16.vlgmr.msra.gmra.mrb[0].mxu1 %v789_v19 }
 0x1b8   : > { %2423 = vmatprep.mubr.bf16.mxu0 %v782_v20  ;;  %2439 = vmatprep.mubr.bf16.mxu1 %v790_v21 }
 0x1bf   : > { %2424 = vmatmul.mubr.bf16.gmra.mrb[4].mxu0 %v783_v22  ;;  %2440 = vmatmul.mubr.bf16.gmra.mrb[4].mxu1 %v791_v23 }
 0x1c0   : > { %2427 = vmatprep.mubr.bf16.mxu0 %v784_v24  ;;  %2443 = vmatprep.mubr.bf16.mxu1 %v792_v25 }
 0x1c7   : > { %2428 = vmatmul.mubr.bf16.gmra.mrb[8].mxu0 %v785_v26  ;;  %2444 = vmatmul.mubr.bf16.gmra.mrb[8].mxu1 %v793_v27 }
 0x1c8   : > { %2431 = vmatprep.mubr.bf16.mxu0 %v786_v28  ;;  %2447 = vmatprep.mubr.bf16.mxu1 %v794_v29 }
 0x1cf   : > { %2432 = vmatmul.mubr.bf16.gmra.mrb[12].mxu0 %v787_v30  ;;  %2448 = vmatmul.mubr.bf16.gmra.mrb[12].mxu1 %v795_v31 }
 0x28a   : > { %v2421_v32 = vpop.f32.mrb[0].mxu0  ;;  %v2437_v33 = vpop.f32.mrb[0].mxu1 }
 0x28b   : > { %v894_v34 = vpop.f32.mrb[1].mxu0  ;;  %v958_v35 = vpop.f32.mrb[1].mxu1 }
 0x28c   : > { %v2422_v36 = vpop.f32.mrb[2].mxu0  ;;  %v2438_v37 = vpop.f32.mrb[2].mxu1 }
 0x28d   : > { %v1022_v38 = vpack.c.bf16 %v2422_v36, %v2421_v32  ;;  %v1030_v39 = vpack.c.bf16 %v2438_v37, %v2437_v33  ;;  %v897_v40 = vpop.f32.mrb[3].mxu0  ;;  %v961_v41 = vpop.f32.mrb[3].mxu1 }
 0x28e   : > { %v1021_v42 = vpack.c.bf16 %v897_v40, %v894_v34  ;;  %v1029_v43 = vpack.c.bf16 %v961_v41, %v958_v35 }
 0x28f   : > { %1040 = vst [vmem:[#allocation2 + $0x8] sm:$0xff] %v1022_v38  ;;  %1048 = vst [vmem:[#allocation2 + $0x48] sm:$0xff] %v1030_v39 }
 0x290   : > { %1039 = vst [vmem:[#allocation2] sm:$0xff] %v1021_v42  ;;  %1047 = vst [vmem:[#allocation2 + $0x40] sm:$0xff] %v1029_v43 }
 0x292   : > { %v2425_v44 = vpop.f32.mrb[4].mxu0  ;;  %v2441_v45 = vpop.f32.mrb[4].mxu1 }
 0x293   : > { %v910_v46 = vpop.f32.mrb[5].mxu0  ;;  %v974_v47 = vpop.f32.mrb[5].mxu1 }
 0x294   : > { %v2426_v48 = vpop.f32.mrb[6].mxu0  ;;  %v2442_v49 = vpop.f32.mrb[6].mxu1 }
 0x295   : > { %v1024_v50 = vpack.c.bf16 %v2426_v48, %v2425_v44  ;;  %v1032_v51 = vpack.c.bf16 %v2442_v49, %v2441_v45  ;;  %v913_v52 = vpop.f32.mrb[7].mxu0  ;;  %v977_v53 = vpop.f32.mrb[7].mxu1 }
 0x296   : > { %v1023_v54 = vpack.c.bf16 %v913_v52, %v910_v46  ;;  %v1031_v55 = vpack.c.bf16 %v977_v53, %v974_v47 }
 0x297   : > { %1042 = vst [vmem:[#allocation2 + $0x18] sm:$0xff] %v1024_v50  ;;  %1050 = vst [vmem:[#allocation2 + $0x58] sm:$0xff] %v1032_v51 }
 0x298   : > { %1041 = vst [vmem:[#allocation2 + $0x10] sm:$0xff] %v1023_v54  ;;  %1049 = vst [vmem:[#allocation2 + $0x50] sm:$0xff] %v1031_v55 }
 0x29a   : > { %v2429_v56 = vpop.f32.mrb[8].mxu0  ;;  %v2445_v57 = vpop.f32.mrb[8].mxu1 }
 0x29b   : > { %v926_v58 = vpop.f32.mrb[9].mxu0  ;;  %v990_v59 = vpop.f32.mrb[9].mxu1 }
 0x29c   : > { %v2430_v60 = vpop.f32.mrb[10].mxu0  ;;  %v2446_v61 = vpop.f32.mrb[10].mxu1 }
 0x29d   : > { %v1026_v62 = vpack.c.bf16 %v2430_v60, %v2429_v56  ;;  %v1034_v63 = vpack.c.bf16 %v2446_v61, %v2445_v57  ;;  %v929_v0 = vpop.f32.mrb[11].mxu0  ;;  %v993_v1 = vpop.f32.mrb[11].mxu1 }
 0x29e   : > { %v1025_v2 = vpack.c.bf16 %v929_v0, %v926_v58  ;;  %v1033_v3 = vpack.c.bf16 %v993_v1, %v990_v59 }
 0x29f   : > { %1044 = vst [vmem:[#allocation2 + $0x28] sm:$0xff] %v1026_v62  ;;  %1052 = vst [vmem:[#allocation2 + $0x68] sm:$0xff] %v1034_v63 }
 0x2a0   : > { %1043 = vst [vmem:[#allocation2 + $0x20] sm:$0xff] %v1025_v2  ;;  %1051 = vst [vmem:[#allocation2 + $0x60] sm:$0xff] %v1033_v3 }
 0x2a2   : > { %v2433_v4 = vpop.f32.mrb[12].mxu0  ;;  %v2449_v5 = vpop.f32.mrb[12].mxu1 }
 0x2a3   : > { %v942_v6 = vpop.f32.mrb[13].mxu0  ;;  %v1006_v7 = vpop.f32.mrb[13].mxu1 }
 0x2a4   : > { %v2434_v8 = vpop.f32.mrb[14].mxu0  ;;  %v2450_v9 = vpop.f32.mrb[14].mxu1 }
 0x2a5   : > { %v1028_v10 = vpack.c.bf16 %v2434_v8, %v2433_v4  ;;  %v1036_v11 = vpack.c.bf16 %v2450_v9, %v2449_v5  ;;  %v945_v12 = vpop.f32.mrb[15].mxu0  ;;  %v1009_v13 = vpop.f32.mrb[15].mxu1 }
 0x2a6   : > { %v1027_v14 = vpack.c.bf16 %v945_v12, %v942_v6  ;;  %v1035_v15 = vpack.c.bf16 %v1009_v13, %v1006_v7 }
 0x2a7   : > { %1046 = vst [vmem:[#allocation2 + $0x38] sm:$0xff] %v1028_v10  ;;  %1054 = vst [vmem:[#allocation2 + $0x78] sm:$0xff] %v1036_v11 }
 0x2a8   : > { %1045 = vst [vmem:[#allocation2 + $0x30] sm:$0xff] %v1027_v14  ;;  %1053 = vst [vmem:[#allocation2 + $0x70] sm:$0xff] %v1035_v15 }
 0x2a9 PF: > { %v1099_v16 = vld [vmem:[#allocation2 + $0x40] sm:$0xff]  ;;  %v1100_v18 = vld [vmem:[#allocation2 + $0x48] sm:$0xff]  ;;  %v1101_v20 = vld [vmem:[#allocation2 + $0x50] sm:$0xff] }
 0x2aa   : > { %v1091_v17 = vld [vmem:[#allocation2] sm:$0xff]  ;;  %2243 = vmatprep.subr.bf16.mxu0 %v1099_v16  ;;  %2483 = vmatprep.subr.bf16.mxu1 %v1099_v16  ;;  %v1092_v19 = vld [vmem:[#allocation2 + $0x8] sm:$0xff]  ;;  %v1093_v22 = vld [vmem:[#allocation2 + $0x10] sm:$0xff] }
 0x2ab   : > { %2244 = vmatpush3.bf16.msra.mxu0 %v1091_v17  ;;  %2491 = vmatpush3.bf16.msra.mxu1 %v1091_v17  ;;  %v2618_v21 = vld [vmem:[#allocation5 + $0x4] ss:$8 sps:$4 sm:$0xff]   ;;  %v1102_v24 = vld [vmem:[#allocation2 + $0x58] sm:$0xff]  ;;  %v2616_v34 = vld [vmem:[#allocation5] ss:$8 sps:$4 sm:$0xff]  }
 0x2ac   : > { %2245 = vmatprep.subr.bf16.mxu0 %v1100_v18  ;;  %2484 = vmatprep.subr.bf16.mxu1 %v1100_v18  ;;  %v2621_v23 = vld [vmem:[#allocation5 + $0x84] ss:$8 sps:$4 sm:$0xff]   ;;  %v1094_v25 = vld [vmem:[#allocation2 + $0x18] sm:$0xff]  ;;  %v2619_v35 = vld [vmem:[#allocation5 + $0x80] ss:$8 sps:$4 sm:$0xff]  }
 0x2ad   : > { %1299 = vmatprep.mubr.bf16.mxu0 %v2618_v21  ;;  %1363 = vmatprep.mubr.bf16.mxu1 %v2621_v23  ;;  %v1103_v26 = vld [vmem:[#allocation2 + $0x60] sm:$0xff]  ;;  %v1104_v28 = vld [vmem:[#allocation2 + $0x68] sm:$0xff]  ;;  %v2622_v36 = vld [vmem:[#allocation5 + $0x14] ss:$8 sps:$4 sm:$0xff]  }
 0x2ae   : > { %v1095_v27 = vld [vmem:[#allocation2 + $0x20] sm:$0xff]  ;;  %v1096_v29 = vld [vmem:[#allocation2 + $0x28] sm:$0xff]  ;;  %v1106_v32 = vld [vmem:[#allocation2 + $0x78] sm:$0xff] }
 0x2af   : > { %2246 = vmatpush3.bf16.msra.mxu0 %v1092_v19  ;;  %2492 = vmatpush3.bf16.msra.mxu1 %v1092_v19  ;;  %v1105_v30 = vld [vmem:[#allocation2 + $0x70] sm:$0xff]  ;;  %v1098_v33 = vld [vmem:[#allocation2 + $0x38] sm:$0xff]  ;;  %v2628_v40 = vld [vmem:[#allocation5 + $0x24] ss:$8 sps:$4 sm:$0xff]  }
 0x2b0   : > { %2247 = vmatprep.subr.bf16.mxu0 %v1101_v20  ;;  %2485 = vmatprep.subr.bf16.mxu1 %v1101_v20  ;;  %v1097_v31 = vld [vmem:[#allocation2 + $0x30] sm:$0xff]  ;;  %v2630_v41 = vld [vmem:[#allocation5 + $0xa4] ss:$8 sps:$4 sm:$0xff]   ;;  %v2632_v42 = vld [vmem:[#allocation5 + $0x20] ss:$8 sps:$4 sm:$0xff]  }
 0x2b1   : > { %v2624_v37 = vld [vmem:[#allocation5 + $0x94] ss:$8 sps:$4 sm:$0xff]   ;;  %v2626_v38 = vld [vmem:[#allocation5 + $0x10] ss:$8 sps:$4 sm:$0xff]   ;;  %v2633_v43 = vld [vmem:[#allocation5 + $0xa0] ss:$8 sps:$4 sm:$0xff]  }
 0x2b2   : > { %v2627_v39 = vld [vmem:[#allocation5 + $0x90] ss:$8 sps:$4 sm:$0xff]   ;;  %v2634_v44 = vld [vmem:[#allocation5 + $0x34] ss:$8 sps:$4 sm:$0xff]   ;;  %v2640_v48 = vld [vmem:[#allocation5 + $0x44] ss:$8 sps:$4 sm:$0xff]  }
 0x2b3   : > { %2248 = vmatpush3.bf16.msra.mxu0 %v1093_v22  ;;  %2493 = vmatpush3.bf16.msra.mxu1 %v1093_v22  ;;  %v2636_v45 = vld [vmem:[#allocation5 + $0xb4] ss:$8 sps:$4 sm:$0xff]   ;;  %v2638_v46 = vld [vmem:[#allocation5 + $0x30] ss:$8 sps:$4 sm:$0xff]   ;;  %v2642_v49 = vld [vmem:[#allocation5 + $0xc4] ss:$8 sps:$4 sm:$0xff]  }
 0x2b4   : > { %2249 = vmatprep.subr.bf16.mxu0 %v1102_v24  ;;  %2486 = vmatprep.subr.bf16.mxu1 %v1102_v24  ;;  %v2639_v47 = vld [vmem:[#allocation5 + $0xb0] ss:$8 sps:$4 sm:$0xff]   ;;  %v2644_v50 = vld [vmem:[#allocation5 + $0x40] ss:$8 sps:$4 sm:$0xff]   ;;  %v2646_v52 = vld [vmem:[#allocation5 + $0x54] ss:$8 sps:$4 sm:$0xff]  }
 0x2b5   : > { %v2645_v51 = vld [vmem:[#allocation5 + $0xc0] ss:$8 sps:$4 sm:$0xff]   ;;  %v2648_v53 = vld [vmem:[#allocation5 + $0xd4] ss:$8 sps:$4 sm:$0xff]   ;;  %v2650_v54 = vld [vmem:[#allocation5 + $0x50] ss:$8 sps:$4 sm:$0xff]  }
 0x2b6   : > { %v2651_v55 = vld [vmem:[#allocation5 + $0xd0] ss:$8 sps:$4 sm:$0xff]   ;;  %v2652_v56 = vld [vmem:[#allocation5 + $0x64] ss:$8 sps:$4 sm:$0xff]   ;;  %v2656_v58 = vld [vmem:[#allocation5 + $0x60] ss:$8 sps:$4 sm:$0xff]  }
 0x2b7   : > { %2250 = vmatpush3.bf16.msra.mxu0 %v1094_v25  ;;  %2494 = vmatpush3.bf16.msra.mxu1 %v1094_v25  ;;  %v2654_v57 = vld [vmem:[#allocation5 + $0xe4] ss:$8 sps:$4 sm:$0xff]   ;;  %v2657_v59 = vld [vmem:[#allocation5 + $0xe0] ss:$8 sps:$4 sm:$0xff]   ;;  %v2658_v60 = vld [vmem:[#allocation5 + $0x74] ss:$8 sps:$4 sm:$0xff]  }
 0x2b8   : > { %2251 = vmatprep.subr.bf16.mxu0 %v1103_v26  ;;  %2487 = vmatprep.subr.bf16.mxu1 %v1103_v26  ;;  %v2660_v61 = vld [vmem:[#allocation5 + $0xf4] ss:$8 sps:$4 sm:$0xff]   ;;  %v2662_v62 = vld [vmem:[#allocation5 + $0x70] ss:$8 sps:$4 sm:$0xff]  }
 0x2b9   : > { %v2663_v63 = vld [vmem:[#allocation5 + $0xf0] ss:$8 sps:$4 sm:$0xff]  }
 0x2bb   : > { %2252 = vmatpush3.bf16.msra.mxu0 %v1095_v27  ;;  %2495 = vmatpush3.bf16.msra.mxu1 %v1095_v27 }
 0x2bc   : > { %2253 = vmatprep.subr.bf16.mxu0 %v1104_v28  ;;  %2488 = vmatprep.subr.bf16.mxu1 %v1104_v28 }
 0x2bf   : > { %2254 = vmatpush3.bf16.msra.mxu0 %v1096_v29  ;;  %2496 = vmatpush3.bf16.msra.mxu1 %v1096_v29 }
 0x2c0   : > { %2255 = vmatprep.subr.bf16.mxu0 %v1105_v30  ;;  %2489 = vmatprep.subr.bf16.mxu1 %v1105_v30 }
 0x2c3   : > { %2256 = vmatpush3.bf16.msra.mxu0 %v1097_v31  ;;  %2497 = vmatpush3.bf16.msra.mxu1 %v1097_v31 }
 0x2c4   : > { %2257 = vmatprep.subr.bf16.mxu0 %v1106_v32  ;;  %2490 = vmatprep.subr.bf16.mxu1 %v1106_v32 }
 0x2c7   : > { %2258 = vmatpush3.bf16.msra.mxu0 %v1098_v33  ;;  %2498 = vmatpush3.bf16.msra.mxu1 %v1098_v33 }
 0x2ca   : > { %1300 = vmatmul.mubr.bf16.vlgmr.msra.gmra.mrb[0].mxu0 %v2616_v34  ;;  %1364 = vmatmul.mubr.bf16.vlgmr.msra.gmra.mrb[0].mxu1 %v2619_v35 }
 0x2cb   : > { %1307 = vmatprep.mubr.bf16.mxu0 %v2622_v36  ;;  %1371 = vmatprep.mubr.bf16.mxu1 %v2624_v37 }
 0x2d2   : > { %1308 = vmatmul.mubr.bf16.gmra.mrb[4].mxu0 %v2626_v38  ;;  %1372 = vmatmul.mubr.bf16.gmra.mrb[4].mxu1 %v2627_v39 }
 0x2d3   : > { %1315 = vmatprep.mubr.bf16.mxu0 %v2628_v40  ;;  %1379 = vmatprep.mubr.bf16.mxu1 %v2630_v41 }
 0x2da   : > { %1316 = vmatmul.mubr.bf16.gmra.mrb[8].mxu0 %v2632_v42  ;;  %1380 = vmatmul.mubr.bf16.gmra.mrb[8].mxu1 %v2633_v43 }
 0x2db   : > { %1323 = vmatprep.mubr.bf16.mxu0 %v2634_v44  ;;  %1387 = vmatprep.mubr.bf16.mxu1 %v2636_v45 }
 0x2e2   : > { %1324 = vmatmul.mubr.bf16.gmra.mrb[12].mxu0 %v2638_v46  ;;  %1388 = vmatmul.mubr.bf16.gmra.mrb[12].mxu1 %v2639_v47 }
 0x2e3   : > { %1331 = vmatprep.mubr.bf16.mxu0 %v2640_v48  ;;  %1395 = vmatprep.mubr.bf16.mxu1 %v2642_v49 }
 0x2ea   : > { %1332 = vmatmul.mubr.bf16.gmra.mrb[16].mxu0 %v2644_v50  ;;  %1396 = vmatmul.mubr.bf16.gmra.mrb[16].mxu1 %v2645_v51 }
 0x2eb   : > { %1339 = vmatprep.mubr.bf16.mxu0 %v2646_v52  ;;  %1403 = vmatprep.mubr.bf16.mxu1 %v2648_v53 }
 0x2f2   : > { %1340 = vmatmul.mubr.bf16.gmra.mrb[20].mxu0 %v2650_v54  ;;  %1404 = vmatmul.mubr.bf16.gmra.mrb[20].mxu1 %v2651_v55 }
 0x2f3   : > { %1347 = vmatprep.mubr.bf16.mxu0 %v2652_v56  ;;  %1411 = vmatprep.mubr.bf16.mxu1 %v2654_v57 }
 0x2fa   : > { %1348 = vmatmul.mubr.bf16.gmra.mrb[24].mxu0 %v2656_v58  ;;  %1412 = vmatmul.mubr.bf16.gmra.mrb[24].mxu1 %v2657_v59 }
 0x2fb   : > { %1355 = vmatprep.mubr.bf16.mxu0 %v2658_v60  ;;  %1419 = vmatprep.mubr.bf16.mxu1 %v2660_v61 }
 0x302   : > { %1356 = vmatmul.mubr.bf16.gmra.mrb[28].mxu0 %v2662_v62  ;;  %1420 = vmatmul.mubr.bf16.gmra.mrb[28].mxu1 %v2663_v63 }
 0x39d   : > { %v2259_v0 = vpop.f32.mrb[0].mxu0  ;;  %v2307_v1 = vpop.f32.mrb[0].mxu1 }
 0x39e   : > { %v2260_v2 = vpop.f32.mrb[1].mxu0  ;;  %v2308_v3 = vpop.f32.mrb[1].mxu1 }
 0x39f   : > { %v3051_v4 = vadd.f32 %v2260_v2, %v2259_v0  ;;  %v3053_v5 = vadd.f32 %v2308_v3, %v2307_v1  ;;  %v2262_v6 = vpop.f32.mrb[2].mxu0  ;;  %v2310_v7 = vpop.f32.mrb[2].mxu1 }
 0x3a0   : > { %v2263_v8 = vpop.f32.mrb[3].mxu0  ;;  %v2311_v9 = vpop.f32.mrb[3].mxu1 }
 0x3a1   : > { %v3055_v10 = vadd.f32 %v2263_v8, %v2262_v6  ;;  %v3057_v11 = vadd.f32 %v2311_v9, %v2310_v7 }
 0x3a5   : > { %v2265_v12 = vpop.f32.mrb[4].mxu0  ;;  %v2313_v13 = vpop.f32.mrb[4].mxu1 }
 0x3a6   : > { %v2266_v14 = vpop.f32.mrb[5].mxu0  ;;  %v2314_v15 = vpop.f32.mrb[5].mxu1 }
 0x3a7   : > { %v3059_v16 = vadd.f32 %v2266_v14, %v2265_v12  ;;  %v3061_v17 = vadd.f32 %v2314_v15, %v2313_v13  ;;  %v2268_v18 = vpop.f32.mrb[6].mxu0  ;;  %v2316_v19 = vpop.f32.mrb[6].mxu1 }
 0x3a8   : > { %v2269_v20 = vpop.f32.mrb[7].mxu0  ;;  %v2317_v21 = vpop.f32.mrb[7].mxu1 }
 0x3a9   : > { %v3063_v22 = vadd.f32 %v2269_v20, %v2268_v18  ;;  %v3065_v23 = vadd.f32 %v2317_v21, %v2316_v19 }
 0x3ad   : > { %v2271_v24 = vpop.f32.mrb[8].mxu0  ;;  %v2319_v25 = vpop.f32.mrb[8].mxu1 }
 0x3ae   : > { %v2272_v26 = vpop.f32.mrb[9].mxu0  ;;  %v2320_v27 = vpop.f32.mrb[9].mxu1 }
 0x3af   : > { %v3067_v28 = vadd.f32 %v2272_v26, %v2271_v24  ;;  %v3069_v29 = vadd.f32 %v2320_v27, %v2319_v25  ;;  %v2274_v30 = vpop.f32.mrb[10].mxu0  ;;  %v2322_v31 = vpop.f32.mrb[10].mxu1 }
 0x3b0   : > { %v2275_v32 = vpop.f32.mrb[11].mxu0  ;;  %v2323_v33 = vpop.f32.mrb[11].mxu1 }
 0x3b1   : > { %v3071_v34 = vadd.f32 %v2275_v32, %v2274_v30  ;;  %v3073_v35 = vadd.f32 %v2323_v33, %v2322_v31 }
 0x3b5   : > { %v2277_v36 = vpop.f32.mrb[12].mxu0  ;;  %v2325_v37 = vpop.f32.mrb[12].mxu1 }
 0x3b6   : > { %v2278_v38 = vpop.f32.mrb[13].mxu0  ;;  %v2326_v39 = vpop.f32.mrb[13].mxu1 }
 0x3b7   : > { %v3075_v40 = vadd.f32 %v2278_v38, %v2277_v36  ;;  %v3077_v41 = vadd.f32 %v2326_v39, %v2325_v37  ;;  %v2280_v42 = vpop.f32.mrb[14].mxu0  ;;  %v2328_v43 = vpop.f32.mrb[14].mxu1 }
 0x3b8   : > { %v2281_v44 = vpop.f32.mrb[15].mxu0  ;;  %v2329_v45 = vpop.f32.mrb[15].mxu1 }
 0x3b9   : > { %v3079_v46 = vadd.f32 %v2281_v44, %v2280_v42  ;;  %v3081_v47 = vadd.f32 %v2329_v45, %v2328_v43 }
 0x3bd   : > { %v2283_v48 = vpop.f32.mrb[16].mxu0  ;;  %v2331_v49 = vpop.f32.mrb[16].mxu1 }
 0x3be   : > { %v2284_v50 = vpop.f32.mrb[17].mxu0  ;;  %v2332_v51 = vpop.f32.mrb[17].mxu1 }
 0x3bf   : > { %v3083_v52 = vadd.f32 %v2284_v50, %v2283_v48  ;;  %v3085_v53 = vadd.f32 %v2332_v51, %v2331_v49  ;;  %v2286_v54 = vpop.f32.mrb[18].mxu0  ;;  %v2334_v55 = vpop.f32.mrb[18].mxu1  ;;  %v3120_v48 = vld [vmem:[%s3258_s3] ss:$0 sm:$0xff] (!%p2118_p1) }
 0x3c0   : > { %v2287_v56 = vpop.f32.mrb[19].mxu0  ;;  %v2335_v57 = vpop.f32.mrb[19].mxu1  ;;  %v1611_v49 = vadd.f32 (!%p2118_p1), %v3051_v4, %v3120_v48  ;;  %v1612_v50 = vadd.f32 (!%p2118_p1), %v3055_v10, %v3120_v48  ;;  %v1613_v51 = vadd.f32 (!%p2118_p1), %v3059_v16, %v3120_v48 }
 0x3c1   : > { %v3087_v58 = vadd.f32 %v2287_v56, %v2286_v54  ;;  %v3089_v59 = vadd.f32 %v2335_v57, %v2334_v55  ;;  %v1614_v54 = vadd.f32 (!%p2118_p1), %v3063_v22, %v3120_v48  ;;  %v1615_v55 = vadd.f32 (!%p2118_p1), %v3067_v28, %v3120_v48 }
 0x3c2   : > { %v1616_v56 = vadd.f32 (!%p2118_p1), %v3071_v34, %v3120_v48  ;;  %v1617_v57 = vadd.f32 (!%p2118_p1), %v3075_v40, %v3120_v48 }
 0x3c5   : > { %v2289_v60 = vpop.f32.mrb[20].mxu0  ;;  %v2337_v61 = vpop.f32.mrb[20].mxu1 }
 0x3c6   : > { %v2290_v62 = vpop.f32.mrb[21].mxu0  ;;  %v2338_v63 = vpop.f32.mrb[21].mxu1 }
 0x3c7   : > { %v3091_v0 = vadd.f32 %v2290_v62, %v2289_v60  ;;  %v3093_v1 = vadd.f32 %v2338_v63, %v2337_v61  ;;  %v2292_v2 = vpop.f32.mrb[22].mxu0  ;;  %v2340_v3 = vpop.f32.mrb[22].mxu1  ;;  %v1618_v60 = vadd.f32 (!%p2118_p1), %v3079_v46, %v3120_v48  ;;  %v1643_v61 = vmax.f32 (!%p2118_p1), %v1611_v49, 0.0 }
 0x3c8   : > { %v2293_v6 = vpop.f32.mrb[23].mxu0  ;;  %v2341_v7 = vpop.f32.mrb[23].mxu1  ;;  %v1644_v62 = vmax.f32 (!%p2118_p1), %v1612_v50, 0.0  ;;  %v1645_v63 = vmax.f32 (!%p2118_p1), %v1613_v51, 0.0 }
 0x3c9   : > { %v3095_v8 = vadd.f32 %v2293_v6, %v2292_v2  ;;  %v3097_v9 = vadd.f32 %v2341_v7, %v2340_v3  ;;  %v1646_v2 = vmax.f32 (!%p2118_p1), %v1614_v54, 0.0  ;;  %v1647_v3 = vmax.f32 (!%p2118_p1), %v1615_v55, 0.0 }
 0x3ca   : > { %v1648_v6 = vmax.f32 (!%p2118_p1), %v1616_v56, 0.0  ;;  %v1649_v7 = vmax.f32 (!%p2118_p1), %v1617_v57, 0.0  ;;  %v1627_v55 = vadd.f32 (!%p2118_p1), %v3053_v5, %v3120_v48 }
 0x3cd   : > { %v2295_v12 = vpop.f32.mrb[24].mxu0  ;;  %v2343_v13 = vpop.f32.mrb[24].mxu1 }
 0x3ce   : > { %v2296_v14 = vpop.f32.mrb[25].mxu0  ;;  %v2344_v15 = vpop.f32.mrb[25].mxu1 }
 0x3cf   : > { %v3099_v18 = vadd.f32 %v2296_v14, %v2295_v12  ;;  %v3101_v19 = vadd.f32 %v2344_v15, %v2343_v13  ;;  %v2298_v20 = vpop.f32.mrb[26].mxu0  ;;  %v2346_v21 = vpop.f32.mrb[26].mxu1  ;;  %v1650_v12 = vmax.f32 (!%p2118_p1), %v1618_v60, 0.0  ;;  %v1675_v13 = vpack.c.bf16 (!%p2118_p1), %v1644_v62, %v1643_v61 }
 0x3d0   : > { %v2299_v24 = vpop.f32.mrb[27].mxu0  ;;  %v2347_v25 = vpop.f32.mrb[27].mxu1  ;;  %v1676_v14 = vpack.c.bf16 (!%p2118_p1), %v1646_v2, %v1645_v63  ;;  %v1619_v15 = vadd.f32 (!%p2118_p1), %v3083_v52, %v3120_v48  ;;  %v1628_v61 = vadd.f32 (!%p2118_p1), %v3057_v11, %v3120_v48  ;;  %v1659_v63 = vmax.f32 (!%p2118_p1), %v1627_v55, 0.0 }
 0x3d1   : > { %v3103_v26 = vadd.f32 %v2299_v24, %v2298_v20  ;;  %v3105_v27 = vadd.f32 %v2347_v25, %v2346_v21  ;;  %v1620_v20 = vadd.f32 (!%p2118_p1), %v3087_v58, %v3120_v48  ;;  %v1677_v21 = vpack.c.bf16 (!%p2118_p1), %v1648_v6, %v1647_v3  ;;  %1695 = vst [vmem:[#allocation3] sm:$0xff] (!%p2118_p1), %v1675_v13 }
 0x3d2   : > { %v1678_v24 = vpack.c.bf16 (!%p2118_p1), %v1650_v12, %v1649_v7  ;;  %v1621_v25 = vadd.f32 (!%p2118_p1), %v3091_v0, %v3120_v48  ;;  %1696 = vst [vmem:[#allocation3 + $0x8] sm:$0xff] (!%p2118_p1), %v1676_v14  ;;  %v1629_v2 = vadd.f32 (!%p2118_p1), %v3061_v17, %v3120_v48  ;;  %v1630_v3 = vadd.f32 (!%p2118_p1), %v3065_v23, %v3120_v48 }
 0x3d3   : > { %1431 = sbr.rel (%p2118_p1) target bundleno = 999 (0x3e7), region = 76  ;;  %1697 = vst [vmem:[#allocation3 + $0x10] sm:$0xff] (!%p2118_p1), %v1677_v21  ;;  %v1660_v7 = vmax.f32 (!%p2118_p1), %v1628_v61, 0.0  ;;  %v1631_v12 = vadd.f32 (!%p2118_p1), %v3069_v29, %v3120_v48  ;;  %v1632_v13 = vadd.f32 (!%p2118_p1), %v3073_v35, %v3120_v48  ;;  %v1634_v21 = vadd.f32 (!%p2118_p1), %v3081_v47, %v3120_v48 }
 0x3d4   : > { %1698 = vst [vmem:[#allocation3 + $0x18] sm:$0xff] (!%p2118_p1), %v1678_v24  ;;  %v1661_v14 = vmax.f32 (!%p2118_p1), %v1629_v2, 0.0  ;;  %v1639_v55 = vadd.f32 (!%p2118_p1), %v3101_v19, %v3120_v48 }
 0x3d5   : > { %v2301_v30 = vpop.f32.mrb[28].mxu0  ;;  %v2349_v31 = vpop.f32.mrb[28].mxu1  ;;  %v1683_v24 = vpack.c.bf16 (!%p2118_p1), %v1660_v7, %v1659_v63 }
 0x3d6   : > { %v2302_v32 = vpop.f32.mrb[29].mxu0  ;;  %v2350_v33 = vpop.f32.mrb[29].mxu1  ;;  %v1671_v2 = vmax.f32 (!%p2118_p1), %v1639_v55, 0.0 }
 0x3d7   : > { %v3107_v36 = vadd.f32 %v2302_v32, %v2301_v30  ;;  %v3109_v37 = vadd.f32 %v2350_v33, %v2349_v31  ;;  %v2304_v38 = vpop.f32.mrb[30].mxu0  ;;  %v2352_v39 = vpop.f32.mrb[30].mxu1  ;;  %v1622_v30 = vadd.f32 (!%p2118_p1), %v3095_v8, %v3120_v48  ;;  %v1651_v31 = vmax.f32 (!%p2118_p1), %v1619_v15, 0.0  ;;  %1703 = vst [vmem:[#allocation3 + $0x40] sm:$0xff] (!%p2118_p1), %v1683_v24 }
 0x3d8   : > { %v2305_v42 = vpop.f32.mrb[31].mxu0  ;;  %v2353_v43 = vpop.f32.mrb[31].mxu1  ;;  %v1652_v32 = vmax.f32 (!%p2118_p1), %v1620_v20, 0.0  ;;  %v1623_v33 = vadd.f32 (!%p2118_p1), %v3099_v18, %v3120_v48  ;;  %v1662_v15 = vmax.f32 (!%p2118_p1), %v1630_v3, 0.0  ;;  %v1633_v20 = vadd.f32 (!%p2118_p1), %v3077_v41, %v3120_v48 }
 0x3d9   : > { %v3111_v44 = vadd.f32 %v2305_v42, %v2304_v38  ;;  %v3113_v45 = vadd.f32 %v2353_v43, %v2352_v39  ;;  %v1624_v38 = vadd.f32 (!%p2118_p1), %v3103_v26, %v3120_v48  ;;  %v1653_v39 = vmax.f32 (!%p2118_p1), %v1621_v25, 0.0 }
 0x3da   : > { %v1654_v42 = vmax.f32 %v1622_v30, 0.0  ;;  %v1625_v43 = vadd.f32 %v3107_v36, %v3120_v48  ;;  %v1679_v50 = vpack.c.bf16 %v1652_v32, %v1651_v31  ;;  %v1655_v51 = vmax.f32 %v1623_v33, 0.0 }
 0x3db   : > { %v1626_v49 = vadd.f32 %v3111_v44, %v3120_v48  ;;  %v1656_v54 = vmax.f32 %v1624_v38, 0.0  ;;  %v1663_v25 = vmax.f32 %v1631_v12, 0.0  ;;  %v1664_v30 = vmax.f32 %v1632_v13, 0.0 }
 0x3dc   : > { %v1680_v56 = vpack.c.bf16 %v1654_v42, %v1653_v39  ;;  %v1657_v57 = vmax.f32 %v1625_v43, 0.0  ;;  %1699 = vst [vmem:[#allocation3 + $0x20] sm:$0xff] %v1679_v50  ;;  %v1635_v31 = vadd.f32 %v3085_v53, %v3120_v48  ;;  %v1684_v32 = vpack.c.bf16 %v1662_v15, %v1661_v14 }
 0x3dd   : > { %v1658_v60 = vmax.f32 %v1626_v49, 0.0  ;;  %v1681_v62 = vpack.c.bf16 %v1656_v54, %v1655_v51  ;;  %v1665_v33 = vmax.f32 %v1633_v20, 0.0  ;;  %v1666_v38 = vmax.f32 %v1634_v21, 0.0 }
 0x3de   : > { %1700 = vst [vmem:[#allocation3 + $0x28] sm:$0xff] %v1680_v56  ;;  %v1636_v39 = vadd.f32 %v3089_v59, %v3120_v48  ;;  %v1685_v42 = vpack.c.bf16 %v1664_v30, %v1663_v25  ;;  %v1667_v43 = vmax.f32 %v1635_v31, 0.0  ;;  %v1637_v49 = vadd.f32 %v3093_v1, %v3120_v48  ;;  %1704 = vst [vmem:[#allocation3 + $0x48] sm:$0xff] %v1684_v32 }
 0x3df   : > { %v1682_v6 = vpack.c.bf16 %v1658_v60, %v1657_v57  ;;  %1701 = vst [vmem:[#allocation3 + $0x30] sm:$0xff] %v1681_v62  ;;  %v1638_v50 = vadd.f32 %v3097_v9, %v3120_v48  ;;  %v1686_v51 = vpack.c.bf16 %v1666_v38, %v1665_v33  ;;  %v1640_v56 = vadd.f32 %v3105_v27, %v3120_v48 }
 0x3e0   : > { %v1668_v54 = vmax.f32 %v1636_v39, 0.0  ;;  %1705 = vst [vmem:[#allocation3 + $0x50] sm:$0xff] %v1685_v42  ;;  %v1669_v57 = vmax.f32 %v1637_v49, 0.0  ;;  %v1641_v61 = vadd.f32 %v3109_v37, %v3120_v48  ;;  %v1642_v62 = vadd.f32 %v3113_v45, %v3120_v48 }
 0x3e1   : > { %1702 = vst [vmem:[#allocation3 + $0x38] sm:$0xff] %v1682_v6  ;;  %v1670_v60 = vmax.f32 %v1638_v50, 0.0  ;;  %1706 = vst [vmem:[#allocation3 + $0x58] sm:$0xff] %v1686_v51  ;;  %v1672_v3 = vmax.f32 %v1640_v56, 0.0 }
 0x3e2   : > { %v1687_v63 = vpack.c.bf16 %v1668_v54, %v1667_v43  ;;  %v1673_v7 = vmax.f32 %v1641_v61, 0.0  ;;  %v1674_v12 = vmax.f32 %v1642_v62, 0.0 }
 0x3e3   : > { %v1688_v6 = vpack.c.bf16 %v1670_v60, %v1669_v57  ;;  %v1689_v13 = vpack.c.bf16 %v1672_v3, %v1671_v2 }
 0x3e4   : > { %1707 = vst [vmem:[#allocation3 + $0x60] sm:$0xff] %v1687_v63  ;;  %v1690_v14 = vpack.c.bf16 %v1674_v12, %v1673_v7 }
 0x3e5   : > { %1708 = vst [vmem:[#allocation3 + $0x68] sm:$0xff] %v1688_v6  ;;  %1709 = vst [vmem:[#allocation3 + $0x70] sm:$0xff] %v1689_v13 }
 0x3e6   : > { %1710 = vst [vmem:[#allocation3 + $0x78] sm:$0xff] %v1690_v14 }
 0x3e7 PF: > { %1714 = sbr.rel (%p2143_p4) target bundleno = 1018 (0x3fa), region = 92  ;;  %v2187_v48 = vld [vmem:[%s3260_s5] ss:$0 sm:$0xff] (!%p2143_p4) }
 0x3e8   : > { %v1893_v15 = vadd.f32 (!%p2143_p4), %v3051_v4, %v2187_v48  ;;  %v1894_v20 = vadd.f32 (!%p2143_p4), %v3055_v10, %v2187_v48  ;;  %v1895_v21 = vadd.f32 (!%p2143_p4), %v3059_v16, %v2187_v48  ;;  %v1896_v24 = vadd.f32 (!%p2143_p4), %v3063_v22, %v2187_v48 }
 0x3e9   : > { %v1897_v25 = vadd.f32 (!%p2143_p4), %v3067_v28, %v2187_v48  ;;  %v1898_v30 = vadd.f32 (!%p2143_p4), %v3071_v34, %v2187_v48  ;;  %v1899_v31 = vadd.f32 (!%p2143_p4), %v3075_v40, %v2187_v48  ;;  %v1900_v32 = vadd.f32 (!%p2143_p4), %v3079_v46, %v2187_v48 }
 0x3ea   : > { %1925 = vst [vmem:[#allocation13] sm:$0xff] (!%p2143_p4), %v1893_v15  ;;  %1926 = vst [vmem:[#allocation13 + $0x8] sm:$0xff] (!%p2143_p4), %v1894_v20  ;;  %v1901_v4 = vadd.f32 (!%p2143_p4), %v3083_v52, %v2187_v48  ;;  %v1902_v10 = vadd.f32 (!%p2143_p4), %v3087_v58, %v2187_v48  ;;  %v1903_v16 = vadd.f32 (!%p2143_p4), %v3091_v0, %v2187_v48 }
 0x3eb   : > { %1927 = vst [vmem:[#allocation13 + $0x10] sm:$0xff] (!%p2143_p4), %v1895_v21  ;;  %1928 = vst [vmem:[#allocation13 + $0x18] sm:$0xff] (!%p2143_p4), %v1896_v24  ;;  %v1904_v22 = vadd.f32 (!%p2143_p4), %v3095_v8, %v2187_v48  ;;  %v1905_v28 = vadd.f32 (!%p2143_p4), %v3099_v18, %v2187_v48  ;;  %v1906_v34 = vadd.f32 (!%p2143_p4), %v3103_v26, %v2187_v48 }
 0x3ec   : > { %1929 = vst [vmem:[#allocation13 + $0x20] sm:$0xff] (!%p2143_p4), %v1897_v25  ;;  %1930 = vst [vmem:[#allocation13 + $0x28] sm:$0xff] (!%p2143_p4), %v1898_v30  ;;  %v1907_v40 = vadd.f32 (!%p2143_p4), %v3107_v36, %v2187_v48  ;;  %v1908_v46 = vadd.f32 (!%p2143_p4), %v3111_v44, %v2187_v48  ;;  %v1909_v52 = vadd.f32 (!%p2143_p4), %v3053_v5, %v2187_v48 }
 0x3ed   : > { %1931 = vst [vmem:[#allocation13 + $0x30] sm:$0xff] (!%p2143_p4), %v1899_v31  ;;  %1932 = vst [vmem:[#allocation13 + $0x38] sm:$0xff] (!%p2143_p4), %v1900_v32  ;;  %v1910_v58 = vadd.f32 (!%p2143_p4), %v3057_v11, %v2187_v48  ;;  %v1911_v0 = vadd.f32 (!%p2143_p4), %v3061_v17, %v2187_v48  ;;  %v1912_v8 = vadd.f32 (!%p2143_p4), %v3065_v23, %v2187_v48 }
 0x3ee   : > { %1933 = vst [vmem:[#allocation13 + $0x40] sm:$0xff] %v1901_v4  ;;  %1934 = vst [vmem:[#allocation13 + $0x48] sm:$0xff] %v1902_v10  ;;  %v1913_v18 = vadd.f32 %v3069_v29, %v2187_v48  ;;  %v1914_v26 = vadd.f32 %v3073_v35, %v2187_v48  ;;  %v1915_v36 = vadd.f32 %v3077_v41, %v2187_v48 }
 0x3ef   : > { %1935 = vst [vmem:[#allocation13 + $0x50] sm:$0xff] %v1903_v16  ;;  %1936 = vst [vmem:[#allocation13 + $0x58] sm:$0xff] %v1904_v22  ;;  %v1916_v44 = vadd.f32 %v3081_v47, %v2187_v48  ;;  %v1917_v5 = vadd.f32 %v3085_v53, %v2187_v48  ;;  %v1918_v11 = vadd.f32 %v3089_v59, %v2187_v48 }
 0x3f0   : > { %1937 = vst [vmem:[#allocation13 + $0x60] sm:$0xff] %v1905_v28  ;;  %1938 = vst [vmem:[#allocation13 + $0x68] sm:$0xff] %v1906_v34  ;;  %v1919_v17 = vadd.f32 %v3093_v1, %v2187_v48  ;;  %v1920_v23 = vadd.f32 %v3097_v9, %v2187_v48  ;;  %v1921_v29 = vadd.f32 %v3101_v19, %v2187_v48 }
 0x3f1   : > { %1939 = vst [vmem:[#allocation13 + $0x70] sm:$0xff] %v1907_v40  ;;  %1940 = vst [vmem:[#allocation13 + $0x78] sm:$0xff] %v1908_v46  ;;  %v1922_v35 = vadd.f32 %v3105_v27, %v2187_v48  ;;  %v1923_v41 = vadd.f32 %v3109_v37, %v2187_v48  ;;  %v1924_v47 = vadd.f32 %v3113_v45, %v2187_v48 }
 0x3f2   : > { %1941 = vst [vmem:[#allocation13 + $0x80] sm:$0xff] %v1909_v52  ;;  %1942 = vst [vmem:[#allocation13 + $0x88] sm:$0xff] %v1910_v58 }
 0x3f3   : > { %1943 = vst [vmem:[#allocation13 + $0x90] sm:$0xff] %v1911_v0  ;;  %1944 = vst [vmem:[#allocation13 + $0x98] sm:$0xff] %v1912_v8 }
 0x3f4   : > { %1945 = vst [vmem:[#allocation13 + $0xa0] sm:$0xff] %v1913_v18  ;;  %1946 = vst [vmem:[#allocation13 + $0xa8] sm:$0xff] %v1914_v26 }
 0x3f5   : > { %1947 = vst [vmem:[#allocation13 + $0xb0] sm:$0xff] %v1915_v36  ;;  %1948 = vst [vmem:[#allocation13 + $0xb8] sm:$0xff] %v1916_v44 }
 0x3f6   : > { %1949 = vst [vmem:[#allocation13 + $0xc0] sm:$0xff] %v1917_v5  ;;  %1950 = vst [vmem:[#allocation13 + $0xc8] sm:$0xff] %v1918_v11 }
 0x3f7   : > { %1951 = vst [vmem:[#allocation13 + $0xd0] sm:$0xff] %v1919_v17  ;;  %1952 = vst [vmem:[#allocation13 + $0xd8] sm:$0xff] %v1920_v23 }
 0x3f8   : > { %1953 = vst [vmem:[#allocation13 + $0xe0] sm:$0xff] %v1921_v29  ;;  %1954 = vst [vmem:[#allocation13 + $0xe8] sm:$0xff] %v1922_v35 }
 0x3f9   : > { %1955 = vst [vmem:[#allocation13 + $0xf0] sm:$0xff] %v1923_v41  ;;  %1956 = vst [vmem:[#allocation13 + $0xf8] sm:$0xff] %v1924_v47 }
 0x3fa PF: > { %p2546_p7 = scmp.eq.s32.totalorder %s2908_s26, 1  ;;  %s2854_s21 = smov [#allocation13]  }
 0x3fb   : > { %s1972_s20 = sshll.u32 %s2854_s21, 4  ;;  %s1973_s20 = int_to_ptr.vmem [resolvable:$true] %s1972_s20 }
 0x3fc   : > { %s2776_s29 = scalar_lea.vmem %s1973_s20, 4096  ;;  %s2782_s7 = scalar_lea.vmem %s1973_s20, 8192 }
 0x3fd   : > { %p2777_p8 = scmp.ne.s32.totalorder %s1973_s20, %s2776_s29  ;;  %p2783_p6 = scmp.lt.s32.totalorder %s1973_s20, %s1973_s20 }
 0x3fe   : > { %p2784_p3 = scmp.lt.s32.totalorder %s2782_s7, %s2776_s29 }
 0x3ff   : > { %p2778_p5 = pnand %p2777_p8, %p2546_p7 }
 0x400   : > { %p2785_p10 = por %p2784_p3, %p2783_p6 }
 0x401   : > { %p2779_p2 = pneg %p2778_p5 }
 0x403   : > { %p2786_p11 = pnand %p2785_p10, %p2779_p2 }
 0x405   : > { %2789 = shalt.err (!%p2786_p11)
}
 0x406   : > { %s2790_s13 = scalar_lea.hbm %s3261_s6, 4096 }
 0x407   : > { %p2791_p9 = scmp.ne.s32.totalorder %s3261_s6, %s2790_s13  ;;  %p2796_p0 = scmp.lt.u32.totalorder %s2790_s13, %s3261_s6 }
 0x409   : > { %p2792_p12 = pnand %p2791_p9, %p2546_p7 }
 0x40b   : > { %p2793_p13 = pneg %p2792_p12 }
 0x40d   : > { %p2798_p1 = pnand %p2796_p0, %p2793_p13 }
 0x40f   : > { %2801 = shalt.err (!%p2798_p1)
}
 0x410   : > { %s2855_s9 = smov 128   ;;  %s2856_s24 = smov 8  }
 0x411   : > { %2516 = dma.vmem_to_hbm [thread:$0]  (%p2546_p7), %s1973_s20, 4096, %s3261_s6, [#allocation7], %s2855_s9, %s2855_s9, %s2856_s24  }
 0x412 PF: > { %s3279_s18 = sadd.s32 4294967294, %s2844_s23   ;;  %p3280_p8 = scmp.ge.s32.totalorder %s2844_s23, 2 }
 0x413   : > { %p2548_p4 = scmp.eq.s32.totalorder %s3279_s18, 1 }
 0x415   : > { %p2534_p5 = pnand %p2548_p4, %p3280_p8 }
 0x417   : > { %2831 = dma.done.wait (!%p2534_p5), [#allocation7], 4096  }
 0x418   : > { %2833 = vsyncadd (!%p2534_p5), [#allocation7], 4294963200  ;;  %s24_s23 = sadd.s32 1, %s2844_s23   ;;  %s3281_s21 = smov %s2840_s22 }
 0x419   : > { %p21_p2 = scmp.ge.s32.totalorder %s24_s23, 4   ;;  %s3282_s22 = smov %s3284_s30 }
 0x41b   :  { %23 = sbr.rel (!%p21_p2) target bundleno = 7 (0x7), region = 152 }
 0x422   :  { %1993 = vsyncpa [#allocation6], 1 }
 0x423   :  { %1995 = vsyncpa [#allocation6 + $0x1], 1 }
 0x424   :  { %1996 = vsyncpa [#allocation9], 1 }
 0x425   :  { %1998 = vsyncpa [#allocation9 + $0x1], 1 }
 0x426   :  { %1999 = vsyncpa [#allocation12], 1 }
 0x427   :  { %2000 = vsyncpa [#allocation7], 1 }
 0x428   :  { %2002 = vsyncpa [#allocation7 + $0x1], 1 }

</bundles_post_ra>
